<compile_context>
chip_gen: v6e
topology: v6e:2x2x1
jax: 0.10.0
libtpu: 0.0.40
codegen_flags: <defaults>
</compile_context>

<pallas_src>
import functools

import jax
import jax.numpy as jnp
from jax.experimental import pallas as pl
from jax.experimental.pallas import tpu as pltpu


# ---------------------------------------------------------------------------
# Fused kernel: bi-LSTM -> attention pooling -> classifier
# ---------------------------------------------------------------------------
def fused_acoustic_kernel(x_ref, msk_ref, wih_ref, whh_ref, b_ref,
                          attn_ref, wc_ref, bc_ref,
                          logits_ref, pooled_ref,
                          gx_ref, bufA_ref, bufB_ref):
    T, B, D = bufA_ref.shape          # D = 2H (both directions fused on lanes)
    H = D // 2

    # ---- hoisted fused input projection (both dirs, all gates, all steps) ----
    # x_ref rows are (t, b) with features [x(t) | x(T-1-t)], so one matmul
    # yields step-aligned gate inputs for the fused fwd/bwd recurrence.
    gx_ref[...] = (jnp.dot(x_ref[...], wih_ref[...],
                           preferred_element_type=jnp.float32) + b_ref[...])

    # ---- hoisted mask compare (reused by every step and by the pooling) ----
    msk = msk_ref[...] != 0.0                      # [T, B, D] bool
    whh = whh_ref[...]                             # [D, 4D], live across loop

    h = jnp.zeros((B, D), jnp.float32)             # [fwd H | bwd H]
    c = jnp.zeros((B, D), jnp.float32)

    # ---- fully unrolled fused recurrence (T static & small) ----
    for s in range(T):
        gates = gx_ref[pl.ds(s * B, B), :] + jnp.dot(
            h, whh, preferred_element_type=jnp.float32)            # [B, 4D]
        # PyTorch gate order i, f, g, o; each block is 2H wide (fwd|bwd).
        i = jax.nn.sigmoid(gates[:, 0 * D:1 * D])
        f = jax.nn.sigmoid(gates[:, 1 * D:2 * D])
        g = jnp.tanh(gates[:, 2 * D:3 * D])
        o = jax.nn.sigmoid(gates[:, 3 * D:4 * D])
        c_new = f * c + i * g
        h_new = o * jnp.tanh(c_new)
        # pack_padded semantics: fwd state freezes past the length; bwd state
        # stays zero through the padded tail (its previous value IS zero).
        m = msk[s]
        c = jnp.where(m, c_new, c)
        h = jnp.where(m, h_new, h)
        # Lane-0-aligned full-row stores; fwd half valid at time s, bwd half
        # valid at time T-1-s.  Recombined after the loop with one select.
        bufA_ref[s, :, :] = h
        bufB_ref[T - 1 - s, :, :] = h

    # ---- learned-vector attention pooling + classifier ----
    lane = jax.lax.broadcasted_iota(jnp.int32, (T, B, D), 2)
    emb = jnp.where(lane < H, bufA_ref[...], bufB_ref[...])         # [T, B, D]

    # attn_ref already contains attention / sqrt(2H)  (folded in wrapper).
    scores = jnp.sum(emb * attn_ref[...], axis=-1, keepdims=True)   # [T, B, 1]
    tmask = msk[:, :, 0:1]                                          # time mask
    scores = jnp.where(tmask, scores, -1.0e6)                       # == s*m - 1e6*(1-m)
    scores = scores - jnp.max(scores, axis=0, keepdims=True)
    p = jnp.exp(scores)
    p = p * pl.reciprocal(jnp.sum(p, axis=0, keepdims=True), approx=True)
    pooled = jnp.sum(p * emb, axis=0)                               # [B, D]

    logits = (jnp.dot(pooled, wc_ref[...],
                      preferred_element_type=jnp.float32) + bc_ref[...])  # [B, C]

    pooled_ref[...] = pooled
    logits_ref[...] = logits


# ---------------------------------------------------------------------------
# Wrapper: layout plumbing (free in XLA) + single pallas_call
# ---------------------------------------------------------------------------
@functools.partial(jax.jit)
def fused_forward(x_bte, lengths, params):
    B, T, E = x_bte.shape
    D = params['whh_blk'].shape[0]          # 2H
    H = D // 2
    C = params['wc_T'].shape[1]

    # time-major + pair x(t) with x(T-1-t) on the feature axis -> [T*B, 2E]
    x_tbe = jnp.transpose(x_bte, (1, 0, 2))
    x_step = jnp.concatenate([x_tbe, x_tbe[::-1]], axis=-1)
    x2d = x_step.reshape(T * B, 2 * E)

    # per-step fused mask: [m(t) broadcast H | m(T-1-t) broadcast H]
    mask_tb = (jnp.arange(T, dtype=jnp.int32)[:, None]
               < lengths[None, :]).astype(jnp.float32)              # [T, B]
    mf = jnp.broadcast_to(mask_tb[:, :, None], (T, B, H))
    mb = jnp.broadcast_to(mask_tb[::-1, :, None], (T, B, H))
    step_mask = jnp.concatenate([mf, mb], axis=-1)                  # [T, B, 2H]

    vmem = pl.BlockSpec(memory_space=pltpu.MemorySpace.VMEM)
    logits, pooled = pl.pallas_call(
        fused_acoustic_kernel,
        out_shape=(jax.ShapeDtypeStruct((B, C), jnp.float32),
                   jax.ShapeDtypeStruct((B, D), jnp.float32)),
        in_specs=[vmem] * 8,
        out_specs=(vmem, vmem),
        scratch_shapes=[
            pltpu.VMEM((T * B, 4 * D), jnp.float32),   # hoisted gate inputs
            pltpu.VMEM((T, B, D), jnp.float32),        # bufA (fwd-time rows)
            pltpu.VMEM((T, B, D), jnp.float32),        # bufB (bwd-time rows)
        ],
    )(x2d, step_mask,
      params['wih_step'], params['whh_blk'], params['b_cat'],
      params['attn'], params['wc_T'], params['bc'])
    return logits, pooled


# ---------------------------------------------------------------------------
# Parameters: raw (PyTorch layout) + fused-kernel layout
# ---------------------------------------------------------------------------
def init_raw_params(key, E, H, C):
    D = 2 * H
    ks = jax.random.split(key, 12)

    def rnd(k, shape, scale=0.1):
        return scale * jax.random.normal(k, shape, dtype=jnp.float32)

    return dict(
        wih_f=rnd(ks[0], (4 * H, E)), whh_f=rnd(ks[1], (4 * H, H)),
        b_f=rnd(ks[2], (4 * H,)) + rnd(ks[3], (4 * H,)),       # b_ih + b_hh
        wih_b=rnd(ks[4], (4 * H, E)), whh_b=rnd(ks[5], (4 * H, H)),
        b_b=rnd(ks[6], (4 * H,)) + rnd(ks[7], (4 * H,)),
        wc=rnd(ks[8], (C, D)), bc=rnd(ks[9], (C,)),
        attention=jax.random.normal(ks[10], (D,), dtype=jnp.float32),
    )


def build_fused_params(raw, E, H):
    """Build the fused / block-diagonal weight layout used by the kernel."""
    D = 2 * H
    zE = jnp.zeros((E, H), jnp.float32)
    zH = jnp.zeros((H, H), jnp.float32)

    def gb(w, g):                      # gate-g block of a [4H, X] torch weight
        return w[g * H:(g + 1) * H, :].T

    wih_cols, whh_cols, b_cols = [], [], []
    for g in range(4):                 # PyTorch gate order i, f, g, o
        # forward columns (x(t) / h_f feed these)
        wih_cols.append(jnp.concatenate([gb(raw['wih_f'], g), zE], axis=0))
        whh_cols.append(jnp.concatenate([gb(raw['whh_f'], g), zH], axis=0))
        b_cols.append(raw['b_f'][g * H:(g + 1) * H])
        # backward columns (x(T-1-t) / h_b feed these)
        wih_cols.append(jnp.concatenate([zE, gb(raw['wih_b'], g)], axis=0))
        whh_cols.append(jnp.concatenate([zH, gb(raw['whh_b'], g)], axis=0))
        b_cols.append(raw['b_b'][g * H:(g + 1) * H])

    return dict(
        wih_step=jnp.concatenate(wih_cols, axis=1),       # [2E, 8H]
        whh_blk=jnp.concatenate(whh_cols, axis=1),        # [2H, 8H] block-diag
        b_cat=jnp.concatenate(b_cols)[None, :],           # [1, 8H]
        attn=(raw['attention'] / jnp.sqrt(jnp.float32(D)))[None, :],  # [1, 2H]
        wc_T=raw['wc'].T,                                  # [2H, C]
        bc=raw['bc'][None, :],                             # [1, C]
    )


# ---------------------------------------------------------------------------
# Forward pass (matches model_acoustic.forward return: (logits, acoustic_embed))
# ---------------------------------------------------------------------------
def model_acoustic_forward(acoustic_input, acoustic_length,
                           semantic_input, semantic_length, params):
    del semantic_input, semantic_length          # unused, exactly as in PyTorch
    return fused_forward(acoustic_input, acoustic_length, params)


# ---------------------------------------------------------------------------
# Pure-JAX reference (PyTorch packed bi-LSTM semantics) for a tolerance check
# ---------------------------------------------------------------------------
def reference_forward(x_bte, lengths, raw):
    B, T, E = x_bte.shape
    H = raw['whh_f'].shape[1]
    D = 2 * H
    mask = (jnp.arange(T)[None, :] < lengths[:, None]).astype(jnp.float32)  # [B,T]

    def cell(x_t, h, c, wih, whh, b):
        gates = x_t @ wih.T + h @ whh.T + b
        i = jax.nn.sigmoid(gates[:, 0 * H:1 * H])
        f = jax.nn.sigmoid(gates[:, 1 * H:2 * H])
        g = jnp.tanh(gates[:, 2 * H:3 * H])
        o = jax.nn.sigmoid(gates[:, 3 * H:4 * H])
        c2 = f * c + i * g
        return o * jnp.tanh(c2), c2

    h = jnp.zeros((B, H)); c = jnp.zeros((B, H)); outs_f = []
    for t in range(T):
        h2, c2 = cell(x_bte[:, t], h, c, raw['wih_f'], raw['whh_f'], raw['b_f'])
        m = mask[:, t:t + 1]
        outs_f.append(h2 * m)
        h = jnp.where(m > 0, h2, h); c = jnp.where(m > 0, c2, c)

    h = jnp.zeros((B, H)); c = jnp.zeros((B, H)); outs_b = [None] * T
    for t in range(T - 1, -1, -1):
        h2, c2 = cell(x_bte[:, t], h, c, raw['wih_b'], raw['whh_b'], raw['b_b'])
        m = mask[:, t:t + 1]
        h = jnp.where(m > 0, h2, jnp.zeros_like(h2))
        c = jnp.where(m > 0, c2, jnp.zeros_like(c2))
        outs_b[t] = h

    emb = jnp.stack([jnp.concatenate([outs_f[t], outs_b[t]], axis=-1)
                     for t in range(T)], axis=1)                     # [B,T,D]
    score = (emb @ raw['attention'][:, None]) / jnp.sqrt(jnp.float32(D))
    m3 = mask[:, :, None]
    score = score * m3 - 1.0e6 * (1.0 - m3)
    p = jax.nn.softmax(score, axis=1)                                # [B,T,1]
    pooled = jnp.squeeze(jnp.swapaxes(p, 1, 2) @ emb, axis=1)        # [B,D]
    logits = pooled @ raw['wc'].T + raw['bc']
    return logits, pooled


if __name__ == "__main__":
    config = {
        'acoustic': {'embedding_dim': 16, 'hidden_dim': 32},
        'classifier': {'class_num': 4},
        'loss': {'name': 'ce'},
    }
    B, T = 2, 8
    E = config['acoustic']['embedding_dim']
    H = config['acoustic']['hidden_dim']
    D = 2 * H
    C = config['classifier']['class_num']

    key = jax.random.PRNGKey(0)
    k_in, k_param = jax.random.split(key)

    acoustic_input = jax.random.normal(k_in, (B, T, E), dtype=jnp.float32)
    acoustic_length = jnp.array([T, 5], dtype=jnp.int32)      # max length == T
    semantic_input = jnp.zeros((B, T, E), dtype=jnp.float32)  # unused by forward
    semantic_length = jnp.array([T, T], dtype=jnp.int32)      # unused by forward

    raw = init_raw_params(k_param, E, H, C)
    params = build_fused_params(raw, E, H)

    logits, acoustic_embed = model_acoustic_forward(
        acoustic_input, acoustic_length, semantic_input, semantic_length, params)
    jax.block_until_ready((logits, acoustic_embed))

    assert logits.shape == (B, C), logits.shape
    assert acoustic_embed.shape == (B, D), acoustic_embed.shape
    assert bool(jnp.all(jnp.isfinite(logits)))
    assert bool(jnp.all(jnp.isfinite(acoustic_embed)))

    # correctness vs. a pure-JAX reference of the PyTorch packed bi-LSTM path
    ref_logits, ref_pooled = reference_forward(acoustic_input, acoustic_length, raw)
    dl = float(jnp.max(jnp.abs(logits - ref_logits)))
    dp = float(jnp.max(jnp.abs(acoustic_embed - ref_pooled)))
    assert dl < 2e-2 and dp < 2e-2, (dl, dp)

    print("KERNEL_OK")
</pallas_src>

<mosaic_0001>
module attributes {stable_mosaic.version = 11 : i64} {
  func.func @fused_acoustic_kernel(%arg0: memref<16x32xf32, #tpu.memory_space<vmem>>, %arg1: memref<8x2x64xf32, #tpu.memory_space<vmem>>, %arg2: memref<32x256xf32, #tpu.memory_space<vmem>>, %arg3: memref<64x256xf32, #tpu.memory_space<vmem>>, %arg4: memref<1x256xf32, #tpu.memory_space<vmem>>, %arg5: memref<1x64xf32, #tpu.memory_space<vmem>>, %arg6: memref<64x4xf32, #tpu.memory_space<vmem>>, %arg7: memref<1x4xf32, #tpu.memory_space<vmem>>, %arg8: memref<2x4xf32, #tpu.memory_space<vmem>>, %arg9: memref<2x64xf32, #tpu.memory_space<vmem>>, %arg10: memref<16x256xf32, #tpu.memory_space<vmem>>, %arg11: memref<8x2x64xf32, #tpu.memory_space<vmem>>, %arg12: memref<8x2x64xf32, #tpu.memory_space<vmem>>) attributes {dimension_semantics = [], scalar_prefetch = 0 : i64, scratch_operands = 3 : i64, tpu.core_type = #tpu.core_type<tc>} {
    %c0 = arith.constant 0 : index
    %c0_0 = arith.constant 0 : index
    %0 = vector.load %arg0[%c0, %c0_0] : memref<16x32xf32, #tpu.memory_space<vmem>>, vector<16x32xf32>
    %c0_1 = arith.constant 0 : index
    %c0_2 = arith.constant 0 : index
    %1 = vector.load %arg2[%c0_1, %c0_2] : memref<32x256xf32, #tpu.memory_space<vmem>>, vector<32x256xf32>
    %cst = arith.constant dense<0.000000e+00> : vector<16x256xf32>
    %2 = tpu.matmul %0, %1, %cst {dimension_numbers = #tpu.dot_dimension_numbers<[1], [0], [0], [1], [0, 0, 1, 1], [], []>} : vector<16x32xf32>, vector<32x256xf32>, vector<16x256xf32> -> vector<16x256xf32>
    %c0_3 = arith.constant 0 : index
    %c0_4 = arith.constant 0 : index
    %3 = vector.load %arg4[%c0_3, %c0_4] : memref<1x256xf32, #tpu.memory_space<vmem>>, vector<1x256xf32>
    %4 = vector.broadcast %3 : vector<1x256xf32> to vector<16x256xf32>
    %5 = arith.addf %2, %4 : vector<16x256xf32>
    %c0_5 = arith.constant 0 : index
    %c0_6 = arith.constant 0 : index
    %6 = vector.load %arg10[%c0_5, %c0_6] : memref<16x256xf32, #tpu.memory_space<vmem>>, vector<16x256xf32>
    tpu.vector_store %arg10[%c0_5, %c0_6], %5 {strides = array<i32>} : memref<16x256xf32, #tpu.memory_space<vmem>>, vector<16x256xf32>,
    %c0_7 = arith.constant 0 : index
    %c0_8 = arith.constant 0 : index
    %c0_9 = arith.constant 0 : index
    %7 = vector.load %arg1[%c0_7, %c0_8, %c0_9] : memref<8x2x64xf32, #tpu.memory_space<vmem>>, vector<8x2x64xf32>
    %cst_10 = arith.constant 0.000000e+00 : f32
    %8 = vector.broadcast %cst_10 : f32 to vector<8x2x64xf32>
    %9 = arith.cmpf one, %7, %8 : vector<8x2x64xf32>
    %c0_11 = arith.constant 0 : index
    %c0_12 = arith.constant 0 : index
    %10 = vector.load %arg3[%c0_11, %c0_12] : memref<64x256xf32, #tpu.memory_space<vmem>>, vector<64x256xf32>
    %cst_13 = arith.constant 0.000000e+00 : f32
    %11 = vector.broadcast %cst_13 : f32 to vector<2x64xf32>
    %cst_14 = arith.constant 0.000000e+00 : f32
    %12 = vector.broadcast %cst_14 : f32 to vector<2x64xf32>
    %c0_15 = arith.constant 0 : index
    %c0_16 = arith.constant 0 : index
    %13 = vector.load %arg10[%c0_15, %c0_16] : memref<16x256xf32, #tpu.memory_space<vmem>>, vector<2x256xf32>
    %cst_17 = arith.constant dense<0.000000e+00> : vector<2x256xf32>
    %14 = tpu.matmul %11, %10, %cst_17 {dimension_numbers = #tpu.dot_dimension_numbers<[1], [0], [0], [1], [0, 0, 1, 1], [], []>} : vector<2x64xf32>, vector<64x256xf32>, vector<2x256xf32> -> vector<2x256xf32>
    %15 = arith.addf %13, %14 : vector<2x256xf32>
    %16 = vector.extract_strided_slice %15 {offsets = [0, 0], sizes = [2, 64], strides = [1, 1]} : vector<2x256xf32> to vector<2x64xf32>
    %17 = arith.negf %16 : vector<2x64xf32>
    %18 = math.exp %17 : vector<2x64xf32>
    %cst_18 = arith.constant 1.000000e+00 : f32
    %19 = vector.broadcast %cst_18 : f32 to vector<2x64xf32>
    %20 = arith.addf %19, %18 : vector<2x64xf32>
    %21 = arith.divf %19, %20 : vector<2x64xf32>
    %22 = vector.extract_strided_slice %15 {offsets = [0, 64], sizes = [2, 64], strides = [1, 1]} : vector<2x256xf32> to vector<2x64xf32>
    %23 = arith.negf %22 : vector<2x64xf32>
    %24 = math.exp %23 : vector<2x64xf32>
    %cst_19 = arith.constant 1.000000e+00 : f32
    %25 = vector.broadcast %cst_19 : f32 to vector<2x64xf32>
    %26 = arith.addf %25, %24 : vector<2x64xf32>
    %27 = arith.divf %25, %26 : vector<2x64xf32>
    %28 = vector.extract_strided_slice %15 {offsets = [0, 128], sizes = [2, 64], strides = [1, 1]} : vector<2x256xf32> to vector<2x64xf32>
    %29 = math.tanh %28 : vector<2x64xf32>
    %30 = vector.extract_strided_slice %15 {offsets = [0, 192], sizes = [2, 64], strides = [1, 1]} : vector<2x256xf32> to vector<2x64xf32>
    %31 = arith.negf %30 : vector<2x64xf32>
    %32 = math.exp %31 : vector<2x64xf32>
    %cst_20 = arith.constant 1.000000e+00 : f32
    %33 = vector.broadcast %cst_20 : f32 to vector<2x64xf32>
    %34 = arith.addf %33, %32 : vector<2x64xf32>
    %35 = arith.divf %33, %34 : vector<2x64xf32>
    %36 = arith.mulf %27, %12 : vector<2x64xf32>
    %37 = arith.mulf %21, %29 : vector<2x64xf32>
    %38 = arith.addf %36, %37 : vector<2x64xf32>
    %39 = math.tanh %38 : vector<2x64xf32>
    %40 = arith.mulf %35, %39 : vector<2x64xf32>
    %41 = vector.extract_strided_slice %9 {offsets = [0, 0, 0], sizes = [1, 2, 64], strides = [1, 1, 1]} : vector<8x2x64xi1> to vector<1x2x64xi1>
    %42 = vector.shape_cast %41 : vector<1x2x64xi1> to vector<2x64xi1>
    %43 = arith.select %42, %38, %12 : vector<2x64xi1>, vector<2x64xf32>
    %44 = arith.select %42, %40, %11 : vector<2x64xi1>, vector<2x64xf32>
    %c0_21 = arith.constant 0 : index
    %c0_22 = arith.constant 0 : index
    %c0_23 = arith.constant 0 : index
    %45 = vector.load %arg11[%c0_21, %c0_22, %c0_23] : memref<8x2x64xf32, #tpu.memory_space<vmem>>, vector<1x2x64xf32>
    %46 = vector.shape_cast %45 : vector<1x2x64xf32> to vector<2x64xf32>
    %47 = vector.shape_cast %44 : vector<2x64xf32> to vector<1x2x64xf32>
    tpu.vector_store %arg11[%c0_21, %c0_22, %c0_23], %47 {strides = array<i32>} : memref<8x2x64xf32, #tpu.memory_space<vmem>>, vector<1x2x64xf32>,
    %c7 = arith.constant 7 : index
    %c0_24 = arith.constant 0 : index
    %c0_25 = arith.constant 0 : index
    %48 = vector.load %arg12[%c7, %c0_24, %c0_25] : memref<8x2x64xf32, #tpu.memory_space<vmem>>, vector<1x2x64xf32>
    %49 = vector.shape_cast %48 : vector<1x2x64xf32> to vector<2x64xf32>
    %50 = vector.shape_cast %44 : vector<2x64xf32> to vector<1x2x64xf32>
    tpu.vector_store %arg12[%c7, %c0_24, %c0_25], %50 {strides = array<i32>} : memref<8x2x64xf32, #tpu.memory_space<vmem>>, vector<1x2x64xf32>,
    %c2 = arith.constant 2 : index
    %c0_26 = arith.constant 0 : index
    %51 = vector.load %arg10[%c2, %c0_26] : memref<16x256xf32, #tpu.memory_space<vmem>>, vector<2x256xf32>
    %cst_27 = arith.constant dense<0.000000e+00> : vector<2x256xf32>
    %52 = tpu.matmul %44, %10, %cst_27 {dimension_numbers = #tpu.dot_dimension_numbers<[1], [0], [0], [1], [0, 0, 1, 1], [], []>} : vector<2x64xf32>, vector<64x256xf32>, vector<2x256xf32> -> vector<2x256xf32>
    %53 = arith.addf %51, %52 : vector<2x256xf32>
    %54 = vector.extract_strided_slice %53 {offsets = [0, 0], sizes = [2, 64], strides = [1, 1]} : vector<2x256xf32> to vector<2x64xf32>
    %55 = arith.negf %54 : vector<2x64xf32>
    %56 = math.exp %55 : vector<2x64xf32>
    %cst_28 = arith.constant 1.000000e+00 : f32
    %57 = vector.broadcast %cst_28 : f32 to vector<2x64xf32>
    %58 = arith.addf %57, %56 : vector<2x64xf32>
    %59 = arith.divf %57, %58 : vector<2x64xf32>
    %60 = vector.extract_strided_slice %53 {offsets = [0, 64], sizes = [2, 64], strides = [1, 1]} : vector<2x256xf32> to vector<2x64xf32>
    %61 = arith.negf %60 : vector<2x64xf32>
    %62 = math.exp %61 : vector<2x64xf32>
    %cst_29 = arith.constant 1.000000e+00 : f32
    %63 = vector.broadcast %cst_29 : f32 to vector<2x64xf32>
    %64 = arith.addf %63, %62 : vector<2x64xf32>
    %65 = arith.divf %63, %64 : vector<2x64xf32>
    %66 = vector.extract_strided_slice %53 {offsets = [0, 128], sizes = [2, 64], strides = [1, 1]} : vector<2x256xf32> to vector<2x64xf32>
    %67 = math.tanh %66 : vector<2x64xf32>
    %68 = vector.extract_strided_slice %53 {offsets = [0, 192], sizes = [2, 64], strides = [1, 1]} : vector<2x256xf32> to vector<2x64xf32>
    %69 = arith.negf %68 : vector<2x64xf32>
    %70 = math.exp %69 : vector<2x64xf32>
    %cst_30 = arith.constant 1.000000e+00 : f32
    %71 = vector.broadcast %cst_30 : f32 to vector<2x64xf32>
    %72 = arith.addf %71, %70 : vector<2x64xf32>
    %73 = arith.divf %71, %72 : vector<2x64xf32>
    %74 = arith.mulf %65, %43 : vector<2x64xf32>
    %75 = arith.mulf %59, %67 : vector<2x64xf32>
    %76 = arith.addf %74, %75 : vector<2x64xf32>
    %77 = math.tanh %76 : vector<2x64xf32>
    %78 = arith.mulf %73, %77 : vector<2x64xf32>
    %79 = vector.extract_strided_slice %9 {offsets = [1, 0, 0], sizes = [1, 2, 64], strides = [1, 1, 1]} : vector<8x2x64xi1> to vector<1x2x64xi1>
    %80 = vector.shape_cast %79 : vector<1x2x64xi1> to vector<2x64xi1>
    %81 = arith.select %80, %76, %43 : vector<2x64xi1>, vector<2x64xf32>
    %82 = arith.select %80, %78, %44 : vector<2x64xi1>, vector<2x64xf32>
    %c1 = arith.constant 1 : index
    %c0_31 = arith.constant 0 : index
    %c0_32 = arith.constant 0 : index
    %83 = vector.load %arg11[%c1, %c0_31, %c0_32] : memref<8x2x64xf32, #tpu.memory_space<vmem>>, vector<1x2x64xf32>
    %84 = vector.shape_cast %83 : vector<1x2x64xf32> to vector<2x64xf32>
    %85 = vector.shape_cast %82 : vector<2x64xf32> to vector<1x2x64xf32>
    tpu.vector_store %arg11[%c1, %c0_31, %c0_32], %85 {strides = array<i32>} : memref<8x2x64xf32, #tpu.memory_space<vmem>>, vector<1x2x64xf32>,
    %c6 = arith.constant 6 : index
    %c0_33 = arith.constant 0 : index
    %c0_34 = arith.constant 0 : index
    %86 = vector.load %arg12[%c6, %c0_33, %c0_34] : memref<8x2x64xf32, #tpu.memory_space<vmem>>, vector<1x2x64xf32>
    %87 = vector.shape_cast %86 : vector<1x2x64xf32> to vector<2x64xf32>
    %88 = vector.shape_cast %82 : vector<2x64xf32> to vector<1x2x64xf32>
    tpu.vector_store %arg12[%c6, %c0_33, %c0_34], %88 {strides = array<i32>} : memref<8x2x64xf32, #tpu.memory_space<vmem>>, vector<1x2x64xf32>,
    %c4 = arith.constant 4 : index
    %c0_35 = arith.constant 0 : index
    %89 = vector.load %arg10[%c4, %c0_35] : memref<16x256xf32, #tpu.memory_space<vmem>>, vector<2x256xf32>
    %cst_36 = arith.constant dense<0.000000e+00> : vector<2x256xf32>
    %90 = tpu.matmul %82, %10, %cst_36 {dimension_numbers = #tpu.dot_dimension_numbers<[1], [0], [0], [1], [0, 0, 1, 1], [], []>} : vector<2x64xf32>, vector<64x256xf32>, vector<2x256xf32> -> vector<2x256xf32>
    %91 = arith.addf %89, %90 : vector<2x256xf32>
    %92 = vector.extract_strided_slice %91 {offsets = [0, 0], sizes = [2, 64], strides = [1, 1]} : vector<2x256xf32> to vector<2x64xf32>
    %93 = arith.negf %92 : vector<2x64xf32>
    %94 = math.exp %93 : vector<2x64xf32>
    %cst_37 = arith.constant 1.000000e+00 : f32
    %95 = vector.broadcast %cst_37 : f32 to vector<2x64xf32>
    %96 = arith.addf %95, %94 : vector<2x64xf32>
    %97 = arith.divf %95, %96 : vector<2x64xf32>
    %98 = vector.extract_strided_slice %91 {offsets = [0, 64], sizes = [2, 64], strides = [1, 1]} : vector<2x256xf32> to vector<2x64xf32>
    %99 = arith.negf %98 : vector<2x64xf32>
    %100 = math.exp %99 : vector<2x64xf32>
    %cst_38 = arith.constant 1.000000e+00 : f32
    %101 = vector.broadcast %cst_38 : f32 to vector<2x64xf32>
    %102 = arith.addf %101, %100 : vector<2x64xf32>
    %103 = arith.divf %101, %102 : vector<2x64xf32>
    %104 = vector.extract_strided_slice %91 {offsets = [0, 128], sizes = [2, 64], strides = [1, 1]} : vector<2x256xf32> to vector<2x64xf32>
    %105 = math.tanh %104 : vector<2x64xf32>
    %106 = vector.extract_strided_slice %91 {offsets = [0, 192], sizes = [2, 64], strides = [1, 1]} : vector<2x256xf32> to vector<2x64xf32>
    %107 = arith.negf %106 : vector<2x64xf32>
    %108 = math.exp %107 : vector<2x64xf32>
    %cst_39 = arith.constant 1.000000e+00 : f32
    %109 = vector.broadcast %cst_39 : f32 to vector<2x64xf32>
    %110 = arith.addf %109, %108 : vector<2x64xf32>
    %111 = arith.divf %109, %110 : vector<2x64xf32>
    %112 = arith.mulf %103, %81 : vector<2x64xf32>
    %113 = arith.mulf %97, %105 : vector<2x64xf32>
    %114 = arith.addf %112, %113 : vector<2x64xf32>
    %115 = math.tanh %114 : vector<2x64xf32>
    %116 = arith.mulf %111, %115 : vector<2x64xf32>
    %117 = vector.extract_strided_slice %9 {offsets = [2, 0, 0], sizes = [1, 2, 64], strides = [1, 1, 1]} : vector<8x2x64xi1> to vector<1x2x64xi1>
    %118 = vector.shape_cast %117 : vector<1x2x64xi1> to vector<2x64xi1>
    %119 = arith.select %118, %114, %81 : vector<2x64xi1>, vector<2x64xf32>
    %120 = arith.select %118, %116, %82 : vector<2x64xi1>, vector<2x64xf32>
    %c2_40 = arith.constant 2 : index
    %c0_41 = arith.constant 0 : index
    %c0_42 = arith.constant 0 : index
    %121 = vector.load %arg11[%c2_40, %c0_41, %c0_42] : memref<8x2x64xf32, #tpu.memory_space<vmem>>, vector<1x2x64xf32>
    %122 = vector.shape_cast %121 : vector<1x2x64xf32> to vector<2x64xf32>
    %123 = vector.shape_cast %120 : vector<2x64xf32> to vector<1x2x64xf32>
    tpu.vector_store %arg11[%c2_40, %c0_41, %c0_42], %123 {strides = array<i32>} : memref<8x2x64xf32, #tpu.memory_space<vmem>>, vector<1x2x64xf32>,
    %c5 = arith.constant 5 : index
    %c0_43 = arith.constant 0 : index
    %c0_44 = arith.constant 0 : index
    %124 = vector.load %arg12[%c5, %c0_43, %c0_44] : memref<8x2x64xf32, #tpu.memory_space<vmem>>, vector<1x2x64xf32>
    %125 = vector.shape_cast %124 : vector<1x2x64xf32> to vector<2x64xf32>
    %126 = vector.shape_cast %120 : vector<2x64xf32> to vector<1x2x64xf32>
    tpu.vector_store %arg12[%c5, %c0_43, %c0_44], %126 {strides = array<i32>} : memref<8x2x64xf32, #tpu.memory_space<vmem>>, vector<1x2x64xf32>,
    %c6_45 = arith.constant 6 : index
    %c0_46 = arith.constant 0 : index
    %127 = vector.load %arg10[%c6_45, %c0_46] : memref<16x256xf32, #tpu.memory_space<vmem>>, vector<2x256xf32>
    %cst_47 = arith.constant dense<0.000000e+00> : vector<2x256xf32>
    %128 = tpu.matmul %120, %10, %cst_47 {dimension_numbers = #tpu.dot_dimension_numbers<[1], [0], [0], [1], [0, 0, 1, 1], [], []>} : vector<2x64xf32>, vector<64x256xf32>, vector<2x256xf32> -> vector<2x256xf32>
    %129 = arith.addf %127, %128 : vector<2x256xf32>
    %130 = vector.extract_strided_slice %129 {offsets = [0, 0], sizes = [2, 64], strides = [1, 1]} : vector<2x256xf32> to vector<2x64xf32>
    %131 = arith.negf %130 : vector<2x64xf32>
    %132 = math.exp %131 : vector<2x64xf32>
    %cst_48 = arith.constant 1.000000e+00 : f32
    %133 = vector.broadcast %cst_48 : f32 to vector<2x64xf32>
    %134 = arith.addf %133, %132 : vector<2x64xf32>
    %135 = arith.divf %133, %134 : vector<2x64xf32>
    %136 = vector.extract_strided_slice %129 {offsets = [0, 64], sizes = [2, 64], strides = [1, 1]} : vector<2x256xf32> to vector<2x64xf32>
    %137 = arith.negf %136 : vector<2x64xf32>
    %138 = math.exp %137 : vector<2x64xf32>
    %cst_49 = arith.constant 1.000000e+00 : f32
    %139 = vector.broadcast %cst_49 : f32 to vector<2x64xf32>
    %140 = arith.addf %139, %138 : vector<2x64xf32>
    %141 = arith.divf %139, %140 : vector<2x64xf32>
    %142 = vector.extract_strided_slice %129 {offsets = [0, 128], sizes = [2, 64], strides = [1, 1]} : vector<2x256xf32> to vector<2x64xf32>
    %143 = math.tanh %142 : vector<2x64xf32>
    %144 = vector.extract_strided_slice %129 {offsets = [0, 192], sizes = [2, 64], strides = [1, 1]} : vector<2x256xf32> to vector<2x64xf32>
    %145 = arith.negf %144 : vector<2x64xf32>
    %146 = math.exp %145 : vector<2x64xf32>
    %cst_50 = arith.constant 1.000000e+00 : f32
    %147 = vector.broadcast %cst_50 : f32 to vector<2x64xf32>
    %148 = arith.addf %147, %146 : vector<2x64xf32>
    %149 = arith.divf %147, %148 : vector<2x64xf32>
    %150 = arith.mulf %141, %119 : vector<2x64xf32>
    %151 = arith.mulf %135, %143 : vector<2x64xf32>
    %152 = arith.addf %150, %151 : vector<2x64xf32>
    %153 = math.tanh %152 : vector<2x64xf32>
    %154 = arith.mulf %149, %153 : vector<2x64xf32>
    %155 = vector.extract_strided_slice %9 {offsets = [3, 0, 0], sizes = [1, 2, 64], strides = [1, 1, 1]} : vector<8x2x64xi1> to vector<1x2x64xi1>
    %156 = vector.shape_cast %155 : vector<1x2x64xi1> to vector<2x64xi1>
    %157 = arith.select %156, %152, %119 : vector<2x64xi1>, vector<2x64xf32>
    %158 = arith.select %156, %154, %120 : vector<2x64xi1>, vector<2x64xf32>
    %c3 = arith.constant 3 : index
    %c0_51 = arith.constant 0 : index
    %c0_52 = arith.constant 0 : index
    %159 = vector.load %arg11[%c3, %c0_51, %c0_52] : memref<8x2x64xf32, #tpu.memory_space<vmem>>, vector<1x2x64xf32>
    %160 = vector.shape_cast %159 : vector<1x2x64xf32> to vector<2x64xf32>
    %161 = vector.shape_cast %158 : vector<2x64xf32> to vector<1x2x64xf32>
    tpu.vector_store %arg11[%c3, %c0_51, %c0_52], %161 {strides = array<i32>} : memref<8x2x64xf32, #tpu.memory_space<vmem>>, vector<1x2x64xf32>,
    %c4_53 = arith.constant 4 : index
    %c0_54 = arith.constant 0 : index
    %c0_55 = arith.constant 0 : index
    %162 = vector.load %arg12[%c4_53, %c0_54, %c0_55] : memref<8x2x64xf32, #tpu.memory_space<vmem>>, vector<1x2x64xf32>
    %163 = vector.shape_cast %162 : vector<1x2x64xf32> to vector<2x64xf32>
    %164 = vector.shape_cast %158 : vector<2x64xf32> to vector<1x2x64xf32>
    tpu.vector_store %arg12[%c4_53, %c0_54, %c0_55], %164 {strides = array<i32>} : memref<8x2x64xf32, #tpu.memory_space<vmem>>, vector<1x2x64xf32>,
    %c8 = arith.constant 8 : index
    %c0_56 = arith.constant 0 : index
    %165 = vector.load %arg10[%c8, %c0_56] : memref<16x256xf32, #tpu.memory_space<vmem>>, vector<2x256xf32>
    %cst_57 = arith.constant dense<0.000000e+00> : vector<2x256xf32>
    %166 = tpu.matmul %158, %10, %cst_57 {dimension_numbers = #tpu.dot_dimension_numbers<[1], [0], [0], [1], [0, 0, 1, 1], [], []>} : vector<2x64xf32>, vector<64x256xf32>, vector<2x256xf32> -> vector<2x256xf32>
    %167 = arith.addf %165, %166 : vector<2x256xf32>
    %168 = vector.extract_strided_slice %167 {offsets = [0, 0], sizes = [2, 64], strides = [1, 1]} : vector<2x256xf32> to vector<2x64xf32>
    %169 = arith.negf %168 : vector<2x64xf32>
    %170 = math.exp %169 : vector<2x64xf32>
    %cst_58 = arith.constant 1.000000e+00 : f32
    %171 = vector.broadcast %cst_58 : f32 to vector<2x64xf32>
    %172 = arith.addf %171, %170 : vector<2x64xf32>
    %173 = arith.divf %171, %172 : vector<2x64xf32>
    %174 = vector.extract_strided_slice %167 {offsets = [0, 64], sizes = [2, 64], strides = [1, 1]} : vector<2x256xf32> to vector<2x64xf32>
    %175 = arith.negf %174 : vector<2x64xf32>
    %176 = math.exp %175 : vector<2x64xf32>
    %cst_59 = arith.constant 1.000000e+00 : f32
    %177 = vector.broadcast %cst_59 : f32 to vector<2x64xf32>
    %178 = arith.addf %177, %176 : vector<2x64xf32>
    %179 = arith.divf %177, %178 : vector<2x64xf32>
    %180 = vector.extract_strided_slice %167 {offsets = [0, 128], sizes = [2, 64], strides = [1, 1]} : vector<2x256xf32> to vector<2x64xf32>
    %181 = math.tanh %180 : vector<2x64xf32>
    %182 = vector.extract_strided_slice %167 {offsets = [0, 192], sizes = [2, 64], strides = [1, 1]} : vector<2x256xf32> to vector<2x64xf32>
    %183 = arith.negf %182 : vector<2x64xf32>
    %184 = math.exp %183 : vector<2x64xf32>
    %cst_60 = arith.constant 1.000000e+00 : f32
    %185 = vector.broadcast %cst_60 : f32 to vector<2x64xf32>
    %186 = arith.addf %185, %184 : vector<2x64xf32>
    %187 = arith.divf %185, %186 : vector<2x64xf32>
    %188 = arith.mulf %179, %157 : vector<2x64xf32>
    %189 = arith.mulf %173, %181 : vector<2x64xf32>
    %190 = arith.addf %188, %189 : vector<2x64xf32>
    %191 = math.tanh %190 : vector<2x64xf32>
    %192 = arith.mulf %187, %191 : vector<2x64xf32>
    %193 = vector.extract_strided_slice %9 {offsets = [4, 0, 0], sizes = [1, 2, 64], strides = [1, 1, 1]} : vector<8x2x64xi1> to vector<1x2x64xi1>
    %194 = vector.shape_cast %193 : vector<1x2x64xi1> to vector<2x64xi1>
    %195 = arith.select %194, %190, %157 : vector<2x64xi1>, vector<2x64xf32>
    %196 = arith.select %194, %192, %158 : vector<2x64xi1>, vector<2x64xf32>
    %c4_61 = arith.constant 4 : index
    %c0_62 = arith.constant 0 : index
    %c0_63 = arith.constant 0 : index
    %197 = vector.load %arg11[%c4_61, %c0_62, %c0_63] : memref<8x2x64xf32, #tpu.memory_space<vmem>>, vector<1x2x64xf32>
    %198 = vector.shape_cast %197 : vector<1x2x64xf32> to vector<2x64xf32>
    %199 = vector.shape_cast %196 : vector<2x64xf32> to vector<1x2x64xf32>
    tpu.vector_store %arg11[%c4_61, %c0_62, %c0_63], %199 {strides = array<i32>} : memref<8x2x64xf32, #tpu.memory_space<vmem>>, vector<1x2x64xf32>,
    %c3_64 = arith.constant 3 : index
    %c0_65 = arith.constant 0 : index
    %c0_66 = arith.constant 0 : index
    %200 = vector.load %arg12[%c3_64, %c0_65, %c0_66] : memref<8x2x64xf32, #tpu.memory_space<vmem>>, vector<1x2x64xf32>
    %201 = vector.shape_cast %200 : vector<1x2x64xf32> to vector<2x64xf32>
    %202 = vector.shape_cast %196 : vector<2x64xf32> to vector<1x2x64xf32>
    tpu.vector_store %arg12[%c3_64, %c0_65, %c0_66], %202 {strides = array<i32>} : memref<8x2x64xf32, #tpu.memory_space<vmem>>, vector<1x2x64xf32>,
    %c10 = arith.constant 10 : index
    %c0_67 = arith.constant 0 : index
    %203 = vector.load %arg10[%c10, %c0_67] : memref<16x256xf32, #tpu.memory_space<vmem>>, vector<2x256xf32>
    %cst_68 = arith.constant dense<0.000000e+00> : vector<2x256xf32>
    %204 = tpu.matmul %196, %10, %cst_68 {dimension_numbers = #tpu.dot_dimension_numbers<[1], [0], [0], [1], [0, 0, 1, 1], [], []>} : vector<2x64xf32>, vector<64x256xf32>, vector<2x256xf32> -> vector<2x256xf32>
    %205 = arith.addf %203, %204 : vector<2x256xf32>
    %206 = vector.extract_strided_slice %205 {offsets = [0, 0], sizes = [2, 64], strides = [1, 1]} : vector<2x256xf32> to vector<2x64xf32>
    %207 = arith.negf %206 : vector<2x64xf32>
    %208 = math.exp %207 : vector<2x64xf32>
    %cst_69 = arith.constant 1.000000e+00 : f32
    %209 = vector.broadcast %cst_69 : f32 to vector<2x64xf32>
    %210 = arith.addf %209, %208 : vector<2x64xf32>
    %211 = arith.divf %209, %210 : vector<2x64xf32>
    %212 = vector.extract_strided_slice %205 {offsets = [0, 64], sizes = [2, 64], strides = [1, 1]} : vector<2x256xf32> to vector<2x64xf32>
    %213 = arith.negf %212 : vector<2x64xf32>
    %214 = math.exp %213 : vector<2x64xf32>
    %cst_70 = arith.constant 1.000000e+00 : f32
    %215 = vector.broadcast %cst_70 : f32 to vector<2x64xf32>
    %216 = arith.addf %215, %214 : vector<2x64xf32>
    %217 = arith.divf %215, %216 : vector<2x64xf32>
    %218 = vector.extract_strided_slice %205 {offsets = [0, 128], sizes = [2, 64], strides = [1, 1]} : vector<2x256xf32> to vector<2x64xf32>
    %219 = math.tanh %218 : vector<2x64xf32>
    %220 = vector.extract_strided_slice %205 {offsets = [0, 192], sizes = [2, 64], strides = [1, 1]} : vector<2x256xf32> to vector<2x64xf32>
    %221 = arith.negf %220 : vector<2x64xf32>
    %222 = math.exp %221 : vector<2x64xf32>
    %cst_71 = arith.constant 1.000000e+00 : f32
    %223 = vector.broadcast %cst_71 : f32 to vector<2x64xf32>
    %224 = arith.addf %223, %222 : vector<2x64xf32>
    %225 = arith.divf %223, %224 : vector<2x64xf32>
    %226 = arith.mulf %217, %195 : vector<2x64xf32>
    %227 = arith.mulf %211, %219 : vector<2x64xf32>
    %228 = arith.addf %226, %227 : vector<2x64xf32>
    %229 = math.tanh %228 : vector<2x64xf32>
    %230 = arith.mulf %225, %229 : vector<2x64xf32>
    %231 = vector.extract_strided_slice %9 {offsets = [5, 0, 0], sizes = [1, 2, 64], strides = [1, 1, 1]} : vector<8x2x64xi1> to vector<1x2x64xi1>
    %232 = vector.shape_cast %231 : vector<1x2x64xi1> to vector<2x64xi1>
    %233 = arith.select %232, %228, %195 : vector<2x64xi1>, vector<2x64xf32>
    %234 = arith.select %232, %230, %196 : vector<2x64xi1>, vector<2x64xf32>
    %c5_72 = arith.constant 5 : index
    %c0_73 = arith.constant 0 : index
    %c0_74 = arith.constant 0 : index
    %235 = vector.load %arg11[%c5_72, %c0_73, %c0_74] : memref<8x2x64xf32, #tpu.memory_space<vmem>>, vector<1x2x64xf32>
    %236 = vector.shape_cast %235 : vector<1x2x64xf32> to vector<2x64xf32>
    %237 = vector.shape_cast %234 : vector<2x64xf32> to vector<1x2x64xf32>
    tpu.vector_store %arg11[%c5_72, %c0_73, %c0_74], %237 {strides = array<i32>} : memref<8x2x64xf32, #tpu.memory_space<vmem>>, vector<1x2x64xf32>,
    %c2_75 = arith.constant 2 : index
    %c0_76 = arith.constant 0 : index
    %c0_77 = arith.constant 0 : index
    %238 = vector.load %arg12[%c2_75, %c0_76, %c0_77] : memref<8x2x64xf32, #tpu.memory_space<vmem>>, vector<1x2x64xf32>
    %239 = vector.shape_cast %238 : vector<1x2x64xf32> to vector<2x64xf32>
    %240 = vector.shape_cast %234 : vector<2x64xf32> to vector<1x2x64xf32>
    tpu.vector_store %arg12[%c2_75, %c0_76, %c0_77], %240 {strides = array<i32>} : memref<8x2x64xf32, #tpu.memory_space<vmem>>, vector<1x2x64xf32>,
    %c12 = arith.constant 12 : index
    %c0_78 = arith.constant 0 : index
    %241 = vector.load %arg10[%c12, %c0_78] : memref<16x256xf32, #tpu.memory_space<vmem>>, vector<2x256xf32>
    %cst_79 = arith.constant dense<0.000000e+00> : vector<2x256xf32>
    %242 = tpu.matmul %234, %10, %cst_79 {dimension_numbers = #tpu.dot_dimension_numbers<[1], [0], [0], [1], [0, 0, 1, 1], [], []>} : vector<2x64xf32>, vector<64x256xf32>, vector<2x256xf32> -> vector<2x256xf32>
    %243 = arith.addf %241, %242 : vector<2x256xf32>
    %244 = vector.extract_strided_slice %243 {offsets = [0, 0], sizes = [2, 64], strides = [1, 1]} : vector<2x256xf32> to vector<2x64xf32>
    %245 = arith.negf %244 : vector<2x64xf32>
    %246 = math.exp %245 : vector<2x64xf32>
    %cst_80 = arith.constant 1.000000e+00 : f32
    %247 = vector.broadcast %cst_80 : f32 to vector<2x64xf32>
    %248 = arith.addf %247, %246 : vector<2x64xf32>
    %249 = arith.divf %247, %248 : vector<2x64xf32>
    %250 = vector.extract_strided_slice %243 {offsets = [0, 64], sizes = [2, 64], strides = [1, 1]} : vector<2x256xf32> to vector<2x64xf32>
    %251 = arith.negf %250 : vector<2x64xf32>
    %252 = math.exp %251 : vector<2x64xf32>
    %cst_81 = arith.constant 1.000000e+00 : f32
    %253 = vector.broadcast %cst_81 : f32 to vector<2x64xf32>
    %254 = arith.addf %253, %252 : vector<2x64xf32>
    %255 = arith.divf %253, %254 : vector<2x64xf32>
    %256 = vector.extract_strided_slice %243 {offsets = [0, 128], sizes = [2, 64], strides = [1, 1]} : vector<2x256xf32> to vector<2x64xf32>
    %257 = math.tanh %256 : vector<2x64xf32>
    %258 = vector.extract_strided_slice %243 {offsets = [0, 192], sizes = [2, 64], strides = [1, 1]} : vector<2x256xf32> to vector<2x64xf32>
    %259 = arith.negf %258 : vector<2x64xf32>
    %260 = math.exp %259 : vector<2x64xf32>
    %cst_82 = arith.constant 1.000000e+00 : f32
    %261 = vector.broadcast %cst_82 : f32 to vector<2x64xf32>
    %262 = arith.addf %261, %260 : vector<2x64xf32>
    %263 = arith.divf %261, %262 : vector<2x64xf32>
    %264 = arith.mulf %255, %233 : vector<2x64xf32>
    %265 = arith.mulf %249, %257 : vector<2x64xf32>
    %266 = arith.addf %264, %265 : vector<2x64xf32>
    %267 = math.tanh %266 : vector<2x64xf32>
    %268 = arith.mulf %263, %267 : vector<2x64xf32>
    %269 = vector.extract_strided_slice %9 {offsets = [6, 0, 0], sizes = [1, 2, 64], strides = [1, 1, 1]} : vector<8x2x64xi1> to vector<1x2x64xi1>
    %270 = vector.shape_cast %269 : vector<1x2x64xi1> to vector<2x64xi1>
    %271 = arith.select %270, %266, %233 : vector<2x64xi1>, vector<2x64xf32>
    %272 = arith.select %270, %268, %234 : vector<2x64xi1>, vector<2x64xf32>
    %c6_83 = arith.constant 6 : index
    %c0_84 = arith.constant 0 : index
    %c0_85 = arith.constant 0 : index
    %273 = vector.load %arg11[%c6_83, %c0_84, %c0_85] : memref<8x2x64xf32, #tpu.memory_space<vmem>>, vector<1x2x64xf32>
    %274 = vector.shape_cast %273 : vector<1x2x64xf32> to vector<2x64xf32>
    %275 = vector.shape_cast %272 : vector<2x64xf32> to vector<1x2x64xf32>
    tpu.vector_store %arg11[%c6_83, %c0_84, %c0_85], %275 {strides = array<i32>} : memref<8x2x64xf32, #tpu.memory_space<vmem>>, vector<1x2x64xf32>,
    %c1_86 = arith.constant 1 : index
    %c0_87 = arith.constant 0 : index
    %c0_88 = arith.constant 0 : index
    %276 = vector.load %arg12[%c1_86, %c0_87, %c0_88] : memref<8x2x64xf32, #tpu.memory_space<vmem>>, vector<1x2x64xf32>
    %277 = vector.shape_cast %276 : vector<1x2x64xf32> to vector<2x64xf32>
    %278 = vector.shape_cast %272 : vector<2x64xf32> to vector<1x2x64xf32>
    tpu.vector_store %arg12[%c1_86, %c0_87, %c0_88], %278 {strides = array<i32>} : memref<8x2x64xf32, #tpu.memory_space<vmem>>, vector<1x2x64xf32>,
    %c14 = arith.constant 14 : index
    %c0_89 = arith.constant 0 : index
    %279 = vector.load %arg10[%c14, %c0_89] : memref<16x256xf32, #tpu.memory_space<vmem>>, vector<2x256xf32>
    %cst_90 = arith.constant dense<0.000000e+00> : vector<2x256xf32>
    %280 = tpu.matmul %272, %10, %cst_90 {dimension_numbers = #tpu.dot_dimension_numbers<[1], [0], [0], [1], [0, 0, 1, 1], [], []>} : vector<2x64xf32>, vector<64x256xf32>, vector<2x256xf32> -> vector<2x256xf32>
    %281 = arith.addf %279, %280 : vector<2x256xf32>
    %282 = vector.extract_strided_slice %281 {offsets = [0, 0], sizes = [2, 64], strides = [1, 1]} : vector<2x256xf32> to vector<2x64xf32>
    %283 = arith.negf %282 : vector<2x64xf32>
    %284 = math.exp %283 : vector<2x64xf32>
    %cst_91 = arith.constant 1.000000e+00 : f32
    %285 = vector.broadcast %cst_91 : f32 to vector<2x64xf32>
    %286 = arith.addf %285, %284 : vector<2x64xf32>
    %287 = arith.divf %285, %286 : vector<2x64xf32>
    %288 = vector.extract_strided_slice %281 {offsets = [0, 64], sizes = [2, 64], strides = [1, 1]} : vector<2x256xf32> to vector<2x64xf32>
    %289 = arith.negf %288 : vector<2x64xf32>
    %290 = math.exp %289 : vector<2x64xf32>
    %cst_92 = arith.constant 1.000000e+00 : f32
    %291 = vector.broadcast %cst_92 : f32 to vector<2x64xf32>
    %292 = arith.addf %291, %290 : vector<2x64xf32>
    %293 = arith.divf %291, %292 : vector<2x64xf32>
    %294 = vector.extract_strided_slice %281 {offsets = [0, 128], sizes = [2, 64], strides = [1, 1]} : vector<2x256xf32> to vector<2x64xf32>
    %295 = math.tanh %294 : vector<2x64xf32>
    %296 = vector.extract_strided_slice %281 {offsets = [0, 192], sizes = [2, 64], strides = [1, 1]} : vector<2x256xf32> to vector<2x64xf32>
    %297 = arith.negf %296 : vector<2x64xf32>
    %298 = math.exp %297 : vector<2x64xf32>
    %cst_93 = arith.constant 1.000000e+00 : f32
    %299 = vector.broadcast %cst_93 : f32 to vector<2x64xf32>
    %300 = arith.addf %299, %298 : vector<2x64xf32>
    %301 = arith.divf %299, %300 : vector<2x64xf32>
    %302 = arith.mulf %293, %271 : vector<2x64xf32>
    %303 = arith.mulf %287, %295 : vector<2x64xf32>
    %304 = arith.addf %302, %303 : vector<2x64xf32>
    %305 = math.tanh %304 : vector<2x64xf32>
    %306 = arith.mulf %301, %305 : vector<2x64xf32>
    %307 = vector.extract_strided_slice %9 {offsets = [7, 0, 0], sizes = [1, 2, 64], strides = [1, 1, 1]} : vector<8x2x64xi1> to vector<1x2x64xi1>
    %308 = vector.shape_cast %307 : vector<1x2x64xi1> to vector<2x64xi1>
    %309 = arith.select %308, %306, %272 : vector<2x64xi1>, vector<2x64xf32>
    %c7_94 = arith.constant 7 : index
    %c0_95 = arith.constant 0 : index
    %c0_96 = arith.constant 0 : index
    %310 = vector.load %arg11[%c7_94, %c0_95, %c0_96] : memref<8x2x64xf32, #tpu.memory_space<vmem>>, vector<1x2x64xf32>
    %311 = vector.shape_cast %310 : vector<1x2x64xf32> to vector<2x64xf32>
    %312 = vector.shape_cast %309 : vector<2x64xf32> to vector<1x2x64xf32>
    tpu.vector_store %arg11[%c7_94, %c0_95, %c0_96], %312 {strides = array<i32>} : memref<8x2x64xf32, #tpu.memory_space<vmem>>, vector<1x2x64xf32>,
    %c0_97 = arith.constant 0 : index
    %c0_98 = arith.constant 0 : index
    %c0_99 = arith.constant 0 : index
    %313 = vector.load %arg12[%c0_97, %c0_98, %c0_99] : memref<8x2x64xf32, #tpu.memory_space<vmem>>, vector<1x2x64xf32>
    %314 = vector.shape_cast %313 : vector<1x2x64xf32> to vector<2x64xf32>
    %315 = vector.shape_cast %309 : vector<2x64xf32> to vector<1x2x64xf32>
    tpu.vector_store %arg12[%c0_97, %c0_98, %c0_99], %315 {strides = array<i32>} : memref<8x2x64xf32, #tpu.memory_space<vmem>>, vector<1x2x64xf32>,
    %316 = tpu.iota {dimensions = array<i32: 2>} : vector<8x2x64xi32>
    %c32_i32 = arith.constant 32 : i32
    %317 = vector.broadcast %c32_i32 : i32 to vector<8x2x64xi32>
    %318 = arith.cmpi slt, %316, %317 : vector<8x2x64xi32>
    %c0_100 = arith.constant 0 : index
    %c0_101 = arith.constant 0 : index
    %c0_102 = arith.constant 0 : index
    %319 = vector.load %arg11[%c0_100, %c0_101, %c0_102] : memref<8x2x64xf32, #tpu.memory_space<vmem>>, vector<8x2x64xf32>
    %c0_103 = arith.constant 0 : index
    %c0_104 = arith.constant 0 : index
    %c0_105 = arith.constant 0 : index
    %320 = vector.load %arg12[%c0_103, %c0_104, %c0_105] : memref<8x2x64xf32, #tpu.memory_space<vmem>>, vector<8x2x64xf32>
    %321 = arith.select %318, %319, %320 : vector<8x2x64xi1>, vector<8x2x64xf32>
    %c0_106 = arith.constant 0 : index
    %c0_107 = arith.constant 0 : index
    %322 = vector.load %arg5[%c0_106, %c0_107] : memref<1x64xf32, #tpu.memory_space<vmem>>, vector<1x64xf32>
    %323 = vector.shape_cast %322 : vector<1x64xf32> to vector<1x1x64xf32>
    %324 = vector.broadcast %323 : vector<1x1x64xf32> to vector<8x2x64xf32>
    %325 = arith.mulf %321, %324 : vector<8x2x64xf32>
    %cst_108 = arith.constant dense<0.000000e+00> : vector<8x2xf32>
    %326 = vector.multi_reduction <add>, %325, %cst_108 [2] : vector<8x2x64xf32> to vector<8x2xf32>
    %327 = vector.shape_cast %326 : vector<8x2xf32> to vector<8x2x1xf32>
    %328 = vector.extract_strided_slice %9 {offsets = [0, 0, 0], sizes = [8, 2, 1], strides = [1, 1, 1]} : vector<8x2x64xi1> to vector<8x2x1xi1>
    %cst_109 = arith.constant -1.000000e+06 : f32
    %329 = vector.broadcast %cst_109 : f32 to vector<8x2x1xf32>
    %330 = arith.select %328, %327, %329 : vector<8x2x1xi1>, vector<8x2x1xf32>
    %cst_110 = arith.constant dense<0xFF800000> : vector<2x1xf32>
    %331 = vector.multi_reduction <maximumf>, %330, %cst_110 [0] : vector<8x2x1xf32> to vector<2x1xf32>
    %332 = vector.shape_cast %331 : vector<2x1xf32> to vector<1x2x1xf32>
    %333 = vector.broadcast %332 : vector<1x2x1xf32> to vector<8x2x1xf32>
    %334 = arith.subf %330, %333 : vector<8x2x1xf32>
    %335 = math.exp %334 : vector<8x2x1xf32>
    %cst_111 = arith.constant dense<0.000000e+00> : vector<2x1xf32>
    %336 = vector.multi_reduction <add>, %335, %cst_111 [0] : vector<8x2x1xf32> to vector<2x1xf32>
    %337 = vector.shape_cast %336 : vector<2x1xf32> to vector<1x2x1xf32>
    %338 = tpu.reciprocal %337 {approx = true} : vector<1x2x1xf32> -> vector<1x2x1xf32>
    %339 = vector.broadcast %338 : vector<1x2x1xf32> to vector<8x2x1xf32>
    %340 = arith.mulf %335, %339 : vector<8x2x1xf32>
    %341 = vector.broadcast %340 : vector<8x2x1xf32> to vector<8x2x64xf32>
    %342 = arith.mulf %341, %321 : vector<8x2x64xf32>
    %cst_112 = arith.constant dense<0.000000e+00> : vector<2x64xf32>
    %343 = vector.multi_reduction <add>, %342, %cst_112 [0] : vector<8x2x64xf32> to vector<2x64xf32>
    %c0_113 = arith.constant 0 : index
    %c0_114 = arith.constant 0 : index
    %344 = vector.load %arg6[%c0_113, %c0_114] : memref<64x4xf32, #tpu.memory_space<vmem>>, vector<64x4xf32>
    %cst_115 = arith.constant dense<0.000000e+00> : vector<2x4xf32>
    %345 = tpu.matmul %343, %344, %cst_115 {dimension_numbers = #tpu.dot_dimension_numbers<[1], [0], [0], [1], [0, 0, 1, 1], [], []>} : vector<2x64xf32>, vector<64x4xf32>, vector<2x4xf32> -> vector<2x4xf32>
    %c0_116 = arith.constant 0 : index
    %c0_117 = arith.constant 0 : index
    %346 = vector.load %arg7[%c0_116, %c0_117] : memref<1x4xf32, #tpu.memory_space<vmem>>, vector<1x4xf32>
    %347 = vector.broadcast %346 : vector<1x4xf32> to vector<2x4xf32>
    %348 = arith.addf %345, %347 : vector<2x4xf32>
    %c0_118 = arith.constant 0 : index
    %c0_119 = arith.constant 0 : index
    %349 = vector.load %arg9[%c0_118, %c0_119] : memref<2x64xf32, #tpu.memory_space<vmem>>, vector<2x64xf32>
    tpu.vector_store %arg9[%c0_118, %c0_119], %343 {strides = array<i32>} : memref<2x64xf32, #tpu.memory_space<vmem>>, vector<2x64xf32>,
    %c0_120 = arith.constant 0 : index
    %c0_121 = arith.constant 0 : index
    %350 = vector.load %arg8[%c0_120, %c0_121] : memref<2x4xf32, #tpu.memory_space<vmem>>, vector<2x4xf32>
    tpu.vector_store %arg8[%c0_120, %c0_121], %348 {strides = array<i32>} : memref<2x4xf32, #tpu.memory_space<vmem>>, vector<2x4xf32>,
    return
  }
}

</mosaic_0001>

<bundles_post_ra>
// kernel: fused_forward.1
= control target key start
LH: loop header
LB: loop body
LE: loop exit
PB: predicated region body
PF: predicated region fallthrough
CT: control target
= control target key end

     0   :  { %15 = vsyncpa [#allocation6], 0  ;;  %vm55_vm0 = vcmask 261120   ;;  %v1705_v18 = vmov 0.0   ;;  %s2343_s0 = inlined_call_operand.vmem [shape: f32[16,32], index: 0, kind: input, shape index: {}]   ;;  %s2344_s1 = inlined_call_operand.vmem [shape: f32[8,2,64], index: 1, kind: input, shape index: {}]   ;;  %s2345_s2 = inlined_call_operand.vmem [shape: f32[32,256], index: 2, kind: input, shape index: {}]   ;;  %s2346_s3 = inlined_call_operand.vmem [shape: f32[64,256], index: 3, kind: input, shape index: {}]   ;;  %s2347_s4 = inlined_call_operand.vmem [shape: f32[1,256], index: 4, kind: input, shape index: {}]   ;;  %s2348_s5 = inlined_call_operand.vmem [shape: f32[1,64], index: 5, kind: input, shape index: {}]   ;;  %s2349_s6 = inlined_call_operand.vmem [shape: f32[64,4], index: 6, kind: input, shape index: {}]   ;;  %s2350_s7 = inlined_call_operand.vmem [shape: f32[1,4], index: 7, kind: input, shape index: {}]   ;;  %s2351_s8 = inlined_call_operand.hbm [shape: f32[2,4], index: 8, kind: output, shape index: {0}]   ;;  %s2352_s9 = inlined_call_operand.hbm [shape: f32[2,64], index: 9, kind: output, shape index: {1}]  }
   0x1   :  { %v42_v0 = vld [vmem:[%s2345_s2 + $0x38] sm:$0xff]  ;;  %v41_v2 = vld [vmem:[%s2345_s2 + $0x30] sm:$0xff]  ;;  %v40_v4 = vld [vmem:[%s2345_s2 + $0x28] sm:$0xff]  ;;  %126 = vmatprep.mubr.f32.mxu0 %v1705_v18 }
   0x2   :  { %v1767_v1 = vld [vmem:[%s2346_s3 + $0x78] sm:$0xff]  ;;  %86 = vmatprep.subr.mxu0 %v42_v0  ;;  %v1776_v3 = vld [vmem:[%s2346_s3 + $0x70] sm:$0xff]  ;;  %v1784_v5 = vld [vmem:[%s2346_s3 + $0x68] sm:$0xff] }
   0x3   :  { %197 = vmatprep.subr.mxu1 %v1767_v1  ;;  %87 = vmatpush1.msra.mxu0 %v41_v2  ;;  %v39_v6 = vld [vmem:[%s2345_s2 + $0x20] sm:$0xff]  ;;  %v38_v8 = vld [vmem:[%s2345_s2 + $0x18] sm:$0xff]  ;;  %v37_v10 = vld [vmem:[%s2345_s2 + $0x10] sm:$0xff] }
   0x4   :  { %198 = vmatpush1.msra.mxu1 %v1776_v3  ;;  %v1793_v7 = vld [vmem:[%s2346_s3 + $0x60] sm:$0xff]  ;;  %88 = vmatprep.subr.mxu0 %v40_v4  ;;  %v1802_v9 = vld [vmem:[%s2346_s3 + $0x58] sm:$0xff]  ;;  %v1810_v11 = vld [vmem:[%s2346_s3 + $0x50] sm:$0xff] }
   0x5   :  { %199 = vmatprep.subr.mxu1 %v1784_v5  ;;  %89 = vmatpush1.msra.mxu0 %v39_v6  ;;  %v36_v12 = vld [vmem:[%s2345_s2 + $0x8] sm:$0xff]  ;;  %v35_v14 = vld [vmem:[%s2345_s2] sm:$0xff]  ;;  %v1838_v17 = vld [vmem:[%s2346_s3 + $0x38] sm:$0xff] }
   0x6   :  { %200 = vmatpush1.msra.mxu1 %v1793_v7  ;;  %v1819_v13 = vld [vmem:[%s2346_s3 + $0x48] sm:$0xff]  ;;  %90 = vmatprep.subr.mxu0 %v38_v8  ;;  %v1829_v15 = vld [vmem:[%s2346_s3 + $0x40] sm:$0xff]  ;;  %v1844_v19 = vld [vmem:[%s2346_s3 + $0x30] sm:$0xff] }
   0x7   :  { %201 = vmatprep.subr.mxu1 %v1802_v9  ;;  %91 = vmatpush1.msra.mxu0 %v37_v10  ;;  %v33_v16 = vld [vmem:[%s2343_s0] sm:$0xff] }
   0x8   :  { %202 = vmatpush1.msra.mxu1 %v1810_v11  ;;  %92 = vmatprep.subr.mxu0 %v36_v12 }
   0x9   :  { %203 = vmatprep.subr.mxu1 %v1819_v13  ;;  %93 = vmatpush1.msra.mxu0 %v35_v14 }
   0xa   :  { %16 = vsyncpa [#allocation8], 0  ;;  %204 = vmatpush1.msra.mxu1 %v1829_v15  ;;  %1483 = vmatmul.mubr.msk.f32.vlgmr.msra.gmra.mxu0 %vm55_vm0, %v33_v16  ;;  %v1851_v20 = vld [vmem:[%s2346_s3 + $0x28] sm:$0xff]  ;;  %v1857_v21 = vld [vmem:[%s2346_s3 + $0x20] sm:$0xff]  ;;  %v45_v26 = vlaneseq  ;;  %vm286_vm2 = vcmask 517120   ;;  %vm177_vm3 = vcmask 523264  }
   0xb   :  { %205 = vmatprep.subr.mxu1 %v1838_v17  ;;  %245 = vmatprep.mubr.f32.mxu1 %v1705_v18  ;;  %v1864_v22 = vld [vmem:[%s2346_s3 + $0x18] sm:$0xff]  ;;  %v1871_v23 = vld [vmem:[%s2346_s3 + $0x10] sm:$0xff]  ;;  %v1878_v24 = vld [vmem:[%s2346_s3 + $0x8] sm:$0xff]  ;;  %vm1237_vm12 = vcmask 1024   ;;  %vm1708_vm13 = vmmov 0  }
   0xc   :  { %206 = vmatpush1.msra.mxu1 %v1844_v19  ;;  %311 = vmatprep.subr.mxu0 %v1767_v1  ;;  %v1885_v25 = vld [vmem:[%s2346_s3] sm:$0xff]  ;;  %v46_v27 = vshrl.u32 %v45_v26, 7  ;;  %v34_v50 = vld [vmem:[%s2343_s0 + $0x8] sm:$0xff] }
   0xd   :  { %207 = vmatprep.subr.mxu1 %v1851_v20  ;;  %312 = vmatpush1.msra.mxu0 %v1776_v3  ;;  %v43_v29 = vld [vmem:[%s2347_s4] sm:$0x3]  ;;  %s1706_s4 = smov 64  }
   0xe   :  { %208 = vmatpush1.msra.mxu1 %v1857_v21  ;;  %313 = vmatprep.subr.mxu0 %v1784_v5  ;;  %v47_v28 = vsub.s32 0, %v46_v27  ;;  %v51_v30 = vsub.s32 1, %v46_v27  ;;  %v1945_v59 = vld [vmem:[%s2344_s1] sm:$0x3] }
   0xf   :  { %209 = vmatprep.subr.mxu1 %v1864_v22  ;;  %314 = vmatpush1.msra.mxu0 %v1793_v7  ;;  %vm151_vm1 = vcmp.ne.f32.partialorder %v1945_v59, 0.0 }
  0x10   :  { %210 = vmatpush1.msra.mxu1 %v1871_v23  ;;  %315 = vmatprep.subr.mxu0 %v1802_v9  ;;  %v1928_v31 = vrot.slane %v43_v29, %v47_v28  ;;  %v1930_v32 = vrot.slane %v43_v29, %v51_v30 }
  0x11   :  { %211 = vmatprep.subr.mxu1 %v1878_v24  ;;  %316 = vmatpush1.msra.mxu0 %v1810_v11 }
  0x12   :  { %212 = vmatpush1.msra.mxu1 %v1885_v25  ;;  %317 = vmatprep.subr.mxu0 %v1819_v13 }
  0x13   :  { %246 = vmatmul.mubr.f32.vlgmr.msra.gmra.mxu1 %v1705_v18  ;;  %318 = vmatpush1.msra.mxu0 %v1829_v15 }
  0x14   :  { %319 = vmatprep.subr.mxu0 %v1838_v17  ;;  %132 = vmatprep.mubr.f32.mxu0 %v1705_v18 }
  0x15   :  { %320 = vmatpush1.msra.mxu0 %v1844_v19  ;;  %438 = vmatprep.subr.mxu1 %v1767_v1 }
  0x16   :  { %321 = vmatprep.subr.mxu0 %v1851_v20  ;;  %439 = vmatpush1.msra.mxu1 %v1776_v3 }
  0x17   :  { %322 = vmatpush1.msra.mxu0 %v1857_v21  ;;  %440 = vmatprep.subr.mxu1 %v1784_v5 }
  0x18   :  { %323 = vmatprep.subr.mxu0 %v1864_v22  ;;  %441 = vmatpush1.msra.mxu1 %v1793_v7 }
  0x19   :  { %324 = vmatpush1.msra.mxu0 %v1871_v23  ;;  %442 = vmatprep.subr.mxu1 %v1802_v9 }
  0x1a   :  { %325 = vmatprep.subr.mxu0 %v1878_v24  ;;  %443 = vmatpush1.msra.mxu1 %v1810_v11 }
  0x1b   :  { %326 = vmatpush1.msra.mxu0 %v1885_v25  ;;  %444 = vmatprep.subr.mxu1 %v1819_v13 }
  0x1c   :  { %445 = vmatpush1.msra.mxu1 %v1829_v15  ;;  %486 = vmatprep.mubr.f32.mxu1 %v1705_v18 }
  0x1d   :  { %446 = vmatprep.subr.mxu1 %v1838_v17  ;;  %565 = vmatprep.subr.mxu0 %v1767_v1 }
  0x1e   :  { %447 = vmatpush1.msra.mxu1 %v1844_v19  ;;  %1484 = vmatmul.mubr.msk.f32.gmra.mxu0 %vm55_vm0, %v34_v50 }
  0x1f   :  { %448 = vmatprep.subr.mxu1 %v1851_v20  ;;  %359 = vmatprep.mubr.f32.mxu0 %v1705_v18 }
  0x20   :  { %449 = vmatpush1.msra.mxu1 %v1857_v21 }
  0x21   :  { %450 = vmatprep.subr.mxu1 %v1864_v22 }
  0x22   :  { %451 = vmatpush1.msra.mxu1 %v1871_v23 }
  0x23   :  { %452 = vmatprep.subr.mxu1 %v1878_v24 }
  0x24   :  { %453 = vmatpush1.msra.mxu1 %v1885_v25 }
  0x25   :  { %692 = vmatprep.subr.mxu1 %v1767_v1 }
  0xca   :  { %v128_v33 = vpop.f32.mrf.mxu0 }
  0xcb   :  { %v129_v34 = vadd.f32 %v128_v33, %v1928_v31 }
  0xcc   :  { %v130_v35 = vpop.f32.mrf.mxu0 }
  0xcd   :  { %139 = vst [vmem:[#allocation2 + $0x10] sm:$0xff] %v129_v34  ;;  %v131_v36 = vadd.f32 %v130_v35, %v1930_v32 }
  0xcf   :  { %140 = vst [vmem:[#allocation2] sm:$0xff] %v131_v36 }
  0xd3   :  { %v247_v38 = vpop.f32.mrf.mxu1 }
  0xd4   :  { %v175_v37 = vld [vmem:[#allocation2 + $0x10] sm:$0x3]  ;;  %v290_v14 = vld [vmem:[#allocation2 + $0x10] sm:$0xc] }
  0xd5   :  { %v252_v39 = vadd.f32 %v247_v38, %v175_v37  ;;  %v249_v42 = vpop.f32.mrf.mxu1 }
  0xd6   :  { %v176_v41 = vld [vmem:[#allocation2] sm:$0x3]  ;;  %v291_v30 = vld [vmem:[#allocation2] sm:$0xc] }
  0xd7   :  { %v1485_v40 = vmul.f32 -1.442695, %v252_v39  ;;  %v253_v43 = vadd.f32 %v249_v42, %v176_v41 }
  0xd9   :  { %1547 = vpow2.f32 %v1485_v40  ;;  %v1486_v49 = vmul.f32 -1.442695, %v253_v43 }
  0xda   :  { %1549 = vtanh.f32 %v253_v43 }
  0xde   :  { %v134_v2 = vpop.f32.mrf.mxu0 }
  0xdf   :  { %v135_v4 = vadd.f32 %v134_v2, %v1928_v31 }
  0xe0   :  { %v136_v6 = vpop.f32.mrf.mxu0 }
  0xe1   :  { %141 = vst [vmem:[#allocation2 + $0x18] sm:$0xff] %v135_v4  ;;  %v137_v8 = vadd.f32 %v136_v6, %v1930_v32 }
  0xe3   :  { %142 = vst [vmem:[#allocation2 + $0x8] sm:$0xff] %v137_v8 }
  0xe6   :  { %v1548_v44 = vpop.eup %1547 }
  0xe7   :  { %v257_v45 = vadd.f32 1.0, %v1548_v44  ;;  %v1550_v46 = vpop.eup %1549 }
  0xe9   :  { %1551 = vrcp.f32 %v257_v45 }
  0xea   :  { %1553 = vpow2.f32 %v1486_v49  ;;  %v1989_v49 = vld [vmem:[%s2344_s1 + $0x2] sm:$0x3] }
  0xeb   :  { %vm152_vm4 = vcmp.ne.f32.partialorder %v1989_v49, 0.0 }
  0xf6   :  { %v1552_v47 = vpop.eup %1551 }
  0xf7   :  { %v268_v48 = vmul.f32 %v1552_v47, %v1550_v46  ;;  %v1554_v51 = vpop.eup %1553  ;;  %v267_v53 = vmul.f32 0.0, %v1552_v47 }
  0xf8   :  { %v264_v52 = vadd.f32 1.0, %v1554_v51 }
  0xf9   :  { %270 = vrot.lane.b32.xlu0 %v268_v48, %s1706_s4 }
  0xfa   :  { %1555 = vrcp.f32 %v264_v52 }
 0x107   :  { %v1556_v56 = vpop.eup %1555 }
 0x16b   :  { %v271_v54 = vpop.permute.xlu0 %270 }
 0x16c   :  { %v273_v55 = vadd.f32 %v271_v54, %v267_v53 }
 0x16e   :  { %1557 = vtanh.f32 %v273_v55  ;;  %277 = vrot.lane.b32.xlu1 %v273_v55, %s1706_s4 }
 0x17b   :  { %v1558_v57 = vpop.eup %1557 }
 0x17c   :  { %v275_v58 = vmul.f32 %v1558_v57, %v1556_v56  ;;  %v417_v57 = vld [vmem:[#allocation2 + $0x10] sm:$0x30] }
 0x17e   :  { %282 = vrot.lane.b32.xlu0 %v275_v58, %s1706_s4 }
 0x1e0   :  { %v278_v60 = vpop.permute.xlu1 %277 }
 0x1e1   :  { %v1950_v61 = vsel %vm151_vm1, %v278_v60, 0.0 }
 0x1e2   :  { %v388_v62 = vrot.slane %v1950_v61, 6 }
 0x1e4   :  { %389 = vrot.lane.b32.xlu1 %v388_v62, %s1706_s4 }
 0x1f0   :  { %v283_v63 = vpop.permute.xlu0 %282 }
 0x1f1   :  { %v1956_v0 = vsel %vm151_vm1, %v283_v63, 0.0  ;;  %v418_v63 = vld [vmem:[#allocation2] sm:$0x30] }
 0x1f2   :  { %287 = vst.msk [vmem:[#allocation3] sm:$0x3] %vm286_vm2, %v1956_v0  ;;  %289 = vst.msk [vmem:[#allocation4 + $0xe] sm:$0x3] %vm286_vm2, %v1956_v0  ;;  %1487 = vmatmul.mubr.msk.f32.vlgmr.msra.gmra.mxu0 %vm177_vm3, %v1956_v0 }
 0x1f3   :  { %566 = vmatpush1.msra.mxu0 %v1776_v3  ;;  %613 = vmatprep.mubr.f32.mxu0 %v1705_v18 }
 0x1f4   :  { %567 = vmatprep.subr.mxu0 %v1784_v5 }
 0x1f5   :  { %568 = vmatpush1.msra.mxu0 %v1793_v7 }
 0x1f6   :  { %569 = vmatprep.subr.mxu0 %v1802_v9 }
 0x1f7   :  { %570 = vmatpush1.msra.mxu0 %v1810_v11 }
 0x1f8   :  { %571 = vmatprep.subr.mxu0 %v1819_v13 }
 0x1f9   :  { %572 = vmatpush1.msra.mxu0 %v1829_v15 }
 0x1fa   :  { %573 = vmatprep.subr.mxu0 %v1838_v17 }
 0x1fb   :  { %574 = vmatpush1.msra.mxu0 %v1844_v19 }
 0x1fc   :  { %575 = vmatprep.subr.mxu0 %v1851_v20 }
 0x1fd   :  { %576 = vmatpush1.msra.mxu0 %v1857_v21 }
 0x1fe   :  { %577 = vmatprep.subr.mxu0 %v1864_v22 }
 0x1ff   :  { %578 = vmatpush1.msra.mxu0 %v1871_v23 }
 0x200   :  { %579 = vmatprep.subr.mxu0 %v1878_v24 }
 0x201   :  { %580 = vmatpush1.msra.mxu0 %v1885_v25 }
 0x202   :  { %810 = vmatprep.subr.mxu0 %v1767_v1 }
 0x256   :  { %v390_v39 = vpop.permute.xlu1 %389 }
 0x2b2   :  { %v361_v10 = vpop.f32.mrf.mxu0 }
 0x2b3   :  { %v368_v12 = vrot.slane %v361_v10, 6 }
 0x2b4   :  { %v363_v28 = vpop.f32.mrf.mxu0 }
 0x2b5   :  { %v372_v16 = vadd.f32 %v368_v12, %v290_v14  ;;  %v369_v29 = vrot.slane %v363_v28, 6 }
 0x2b7   :  { %v1488_v27 = vmul.f32 -1.442695, %v372_v16  ;;  %v373_v33 = vadd.f32 %v369_v29, %v291_v30 }
 0x2b9   :  { %1559 = vpow2.f32 %v1488_v27  ;;  %v1489_v32 = vmul.f32 -1.442695, %v373_v33 }
 0x2ba   :  { %1561 = vtanh.f32 %v373_v33 }
 0x2c6   :  { %v1560_v34 = vpop.eup %1559 }
 0x2c7   :  { %v377_v35 = vadd.f32 1.0, %v1560_v34  ;;  %v1562_v31 = vpop.eup %1561 }
 0x2c9   :  { %1563 = vrcp.f32 %v377_v35 }
 0x2ca   :  { %1565 = vpow2.f32 %v1489_v32 }
 0x2d6   :  { %v1564_v36 = vpop.eup %1563 }
 0x2d7   :  { %v393_v37 = vmul.f32 %v1564_v36, %v1562_v31  ;;  %v1566_v38 = vpop.eup %1565  ;;  %v392_v41 = vmul.f32 %v1564_v36, %v390_v39 }
 0x2d8   :  { %v384_v40 = vadd.f32 1.0, %v1566_v38 }
 0x2d9   :  { %395 = vrot.lane.b32.xlu0 %v393_v37, %s1706_s4  ;;  %v2033_v37 = vld [vmem:[%s2344_s1 + $0x4] sm:$0x3] }
 0x2da   :  { %1567 = vrcp.f32 %v384_v40  ;;  %vm153_vm5 = vcmp.ne.f32.partialorder %v2033_v37, 0.0 }
 0x2e7   :  { %v1568_v45 = vpop.eup %1567 }
 0x34b   :  { %v396_v42 = vpop.permute.xlu0 %395 }
 0x34c   :  { %v398_v43 = vadd.f32 %v396_v42, %v392_v41 }
 0x34e   :  { %1569 = vtanh.f32 %v398_v43  ;;  %v402_v44 = vrot.slane %v398_v43, 2 }
 0x350   :  { %403 = vrot.lane.b32.xlu0 %v402_v44, %s1706_s4  ;;  %v544_v44 = vld [vmem:[#allocation2 + $0x10] sm:$0xc0] }
 0x35b   :  { %v1570_v46 = vpop.eup %1569 }
 0x35c   :  { %v400_v47 = vmul.f32 %v1570_v46, %v1568_v45 }
 0x35e   :  { %v408_v48 = vrot.slane %v400_v47, 2 }
 0x360   :  { %409 = vrot.lane.b32.xlu1 %v408_v48, %s1706_s4 }
 0x3c2   :  { %v404_v50 = vpop.permute.xlu0 %403 }
 0x3c3   :  { %v1995_v51 = vsel %vm152_vm4, %v404_v50, %v1950_v61  ;;  %v545_v50 = vld [vmem:[#allocation2] sm:$0xc0] }
 0x3c4   :  { %v515_v52 = vrot.slane %v1995_v51, 4 }
 0x3c6   :  { %516 = vrot.lane.b32.xlu1 %v515_v52, %s1706_s4 }
 0x3d2   :  { %v410_v53 = vpop.permute.xlu1 %409 }
 0x3d3   :  { %v2002_v54 = vsel %vm152_vm4, %v410_v53, %v1956_v0 }
 0x3d4   :  { %414 = vst.msk [vmem:[#allocation3 + $0x2] sm:$0x3] %vm286_vm2, %v2002_v54  ;;  %416 = vst.msk [vmem:[#allocation4 + $0xc] sm:$0x3] %vm286_vm2, %v2002_v54  ;;  %1490 = vmatmul.mubr.msk.f32.vlgmr.msra.gmra.mxu1 %vm177_vm3, %v2002_v54 }
 0x3d5   :  { %693 = vmatpush1.msra.mxu1 %v1776_v3  ;;  %740 = vmatprep.mubr.f32.mxu1 %v1705_v18 }
 0x3d6   :  { %694 = vmatprep.subr.mxu1 %v1784_v5 }
 0x3d7   :  { %695 = vmatpush1.msra.mxu1 %v1793_v7 }
 0x3d8   :  { %696 = vmatprep.subr.mxu1 %v1802_v9 }
 0x3d9   :  { %697 = vmatpush1.msra.mxu1 %v1810_v11 }
 0x3da   :  { %698 = vmatprep.subr.mxu1 %v1819_v13 }
 0x3db   :  { %699 = vmatpush1.msra.mxu1 %v1829_v15 }
 0x3dc   :  { %700 = vmatprep.subr.mxu1 %v1838_v17 }
 0x3dd   :  { %701 = vmatpush1.msra.mxu1 %v1844_v19 }
 0x3de   :  { %702 = vmatprep.subr.mxu1 %v1851_v20 }
 0x3df   :  { %703 = vmatpush1.msra.mxu1 %v1857_v21 }
 0x3e0   :  { %704 = vmatprep.subr.mxu1 %v1864_v22 }
 0x3e1   :  { %705 = vmatpush1.msra.mxu1 %v1871_v23 }
 0x3e2   :  { %706 = vmatprep.subr.mxu1 %v1878_v24 }
 0x3e3   :  { %707 = vmatpush1.msra.mxu1 %v1885_v25 }
 0x3e4   :  { %937 = vmatprep.subr.mxu1 %v1767_v1 }
 0x438   :  { %v517_v16 = vpop.permute.xlu1 %516 }
 0x494   :  { %v488_v55 = vpop.f32.mrf.mxu1 }
 0x495   :  { %v495_v56 = vrot.slane %v488_v55, 4 }
 0x496   :  { %v490_v61 = vpop.f32.mrf.mxu1 }
 0x497   :  { %v499_v58 = vadd.f32 %v495_v56, %v417_v57  ;;  %v496_v62 = vrot.slane %v490_v61, 4 }
 0x499   :  { %v1491_v60 = vmul.f32 -1.442695, %v499_v58  ;;  %v500_v0 = vadd.f32 %v496_v62, %v418_v63 }
 0x49b   :  { %1571 = vpow2.f32 %v1491_v60  ;;  %v1492_v12 = vmul.f32 -1.442695, %v500_v0 }
 0x49c   :  { %1573 = vtanh.f32 %v500_v0 }
 0x4a8   :  { %v1572_v2 = vpop.eup %1571 }
 0x4a9   :  { %v504_v4 = vadd.f32 1.0, %v1572_v2  ;;  %v1574_v6 = vpop.eup %1573 }
 0x4ab   :  { %1575 = vrcp.f32 %v504_v4 }
 0x4ac   :  { %1577 = vpow2.f32 %v1492_v12 }
 0x4b8   :  { %v1576_v8 = vpop.eup %1575 }
 0x4b9   :  { %v520_v10 = vmul.f32 %v1576_v8, %v1574_v6  ;;  %v1578_v14 = vpop.eup %1577  ;;  %v519_v28 = vmul.f32 %v1576_v8, %v517_v16 }
 0x4ba   :  { %v511_v27 = vadd.f32 1.0, %v1578_v14 }
 0x4bb   :  { %522 = vrot.lane.b32.xlu0 %v520_v10, %s1706_s4  ;;  %v2077_v10 = vld [vmem:[%s2344_s1 + $0x6] sm:$0x3] }
 0x4bc   :  { %1579 = vrcp.f32 %v511_v27  ;;  %vm154_vm6 = vcmp.ne.f32.partialorder %v2077_v10, 0.0 }
 0x4c9   :  { %v1580_v34 = vpop.eup %1579 }
 0x52d   :  { %v523_v29 = vpop.permute.xlu0 %522 }
 0x52e   :  { %v525_v30 = vadd.f32 %v523_v29, %v519_v28  ;;  %v671_v28 = vld [vmem:[#allocation2 + $0x18] sm:$0x3] }
 0x530   :  { %1581 = vtanh.f32 %v525_v30  ;;  %v529_v33 = vrot.slane %v525_v30, 4 }
 0x532   :  { %530 = vrot.lane.b32.xlu0 %v529_v33, %s1706_s4 }
 0x53d   :  { %v1582_v35 = vpop.eup %1581 }
 0x53e   :  { %v527_v31 = vmul.f32 %v1582_v35, %v1580_v34  ;;  %v672_v35 = vld [vmem:[#allocation2 + $0x8] sm:$0x3] }
 0x540   :  { %v535_v36 = vrot.slane %v527_v31, 4 }
 0x542   :  { %536 = vrot.lane.b32.xlu1 %v535_v36, %s1706_s4 }
 0x5a4   :  { %v531_v32 = vpop.permute.xlu0 %530 }
 0x5a5   :  { %v2039_v38 = vsel %vm153_vm5, %v531_v32, %v1995_v51 }
 0x5a6   :  { %v642_v39 = vrot.slane %v2039_v38, 2 }
 0x5a8   :  { %643 = vrot.lane.b32.xlu1 %v642_v39, %s1706_s4 }
 0x5b4   :  { %v537_v40 = vpop.permute.xlu1 %536 }
 0x5b5   :  { %v2046_v41 = vsel %vm153_vm5, %v537_v40, %v2002_v54 }
 0x5b6   :  { %541 = vst.msk [vmem:[#allocation3 + $0x4] sm:$0x3] %vm286_vm2, %v2046_v41  ;;  %543 = vst.msk [vmem:[#allocation4 + $0xa] sm:$0x3] %vm286_vm2, %v2046_v41  ;;  %1493 = vmatmul.mubr.msk.f32.vlgmr.msra.gmra.mxu0 %vm177_vm3, %v2046_v41 }
 0x5b7   :  { %811 = vmatpush1.msra.mxu0 %v1776_v3  ;;  %858 = vmatprep.mubr.f32.mxu0 %v1705_v18 }
 0x5b8   :  { %812 = vmatprep.subr.mxu0 %v1784_v5 }
 0x5b9   :  { %813 = vmatpush1.msra.mxu0 %v1793_v7 }
 0x5ba   :  { %814 = vmatprep.subr.mxu0 %v1802_v9 }
 0x5bb   :  { %815 = vmatpush1.msra.mxu0 %v1810_v11 }
 0x5bc   :  { %816 = vmatprep.subr.mxu0 %v1819_v13 }
 0x5bd   :  { %817 = vmatpush1.msra.mxu0 %v1829_v15 }
 0x5be   :  { %818 = vmatprep.subr.mxu0 %v1838_v17 }
 0x5bf   :  { %819 = vmatpush1.msra.mxu0 %v1844_v19 }
 0x5c0   :  { %820 = vmatprep.subr.mxu0 %v1851_v20 }
 0x5c1   :  { %821 = vmatpush1.msra.mxu0 %v1857_v21 }
 0x5c2   :  { %822 = vmatprep.subr.mxu0 %v1864_v22 }
 0x5c3   :  { %823 = vmatpush1.msra.mxu0 %v1871_v23 }
 0x5c4   :  { %824 = vmatprep.subr.mxu0 %v1878_v24 }
 0x5c5   :  { %825 = vmatpush1.msra.mxu0 %v1885_v25 }
 0x5c6   :  { %1064 = vmatprep.subr.mxu0 %v1767_v1 }
 0x61a   :  { %v644_v58 = vpop.permute.xlu1 %643 }
 0x676   :  { %v615_v42 = vpop.f32.mrf.mxu0 }
 0x677   :  { %v622_v43 = vrot.slane %v615_v42, 2 }
 0x678   :  { %v617_v47 = vpop.f32.mrf.mxu0 }
 0x679   :  { %v626_v45 = vadd.f32 %v622_v43, %v544_v44  ;;  %v623_v48 = vrot.slane %v617_v47, 2 }
 0x67b   :  { %v1494_v46 = vmul.f32 -1.442695, %v626_v45  ;;  %v627_v51 = vadd.f32 %v623_v48, %v545_v50 }
 0x67d   :  { %1583 = vpow2.f32 %v1494_v46  ;;  %v1495_v1 = vmul.f32 -1.442695, %v627_v51 }
 0x67e   :  { %1585 = vtanh.f32 %v627_v51 }
 0x68a   :  { %v1584_v52 = vpop.eup %1583 }
 0x68b   :  { %v631_v53 = vadd.f32 1.0, %v1584_v52  ;;  %v1586_v54 = vpop.eup %1585  ;;  %v2113_v52 = vld [vmem:[%s2344_s1 + $0x8] sm:$0x3] }
 0x68c   :  { %vm155_vm7 = vcmp.ne.f32.partialorder %v2113_v52, 0.0 }
 0x68d   :  { %1587 = vrcp.f32 %v631_v53 }
 0x68e   :  { %1589 = vpow2.f32 %v1495_v1 }
 0x69a   :  { %v1588_v55 = vpop.eup %1587 }
 0x69b   :  { %v647_v56 = vmul.f32 %v1588_v55, %v1586_v54  ;;  %v1590_v57 = vpop.eup %1589  ;;  %v646_v61 = vmul.f32 %v1588_v55, %v644_v58 }
 0x69c   :  { %v638_v60 = vadd.f32 1.0, %v1590_v57 }
 0x69d   :  { %649 = vrot.lane.b32.xlu0 %v647_v56, %s1706_s4 }
 0x69e   :  { %1591 = vrcp.f32 %v638_v60 }
 0x6ab   :  { %v1592_v2 = vpop.eup %1591 }
 0x70f   :  { %v650_v62 = vpop.permute.xlu0 %649 }
 0x710   :  { %v652_v63 = vadd.f32 %v650_v62, %v646_v61 }
 0x712   :  { %1593 = vtanh.f32 %v652_v63  ;;  %v656_v0 = vrot.slane %v652_v63, 6 }
 0x714   :  { %657 = vrot.lane.b32.xlu0 %v656_v0, %s1706_s4 }
 0x71f   :  { %v1594_v4 = vpop.eup %1593 }
 0x720   :  { %v654_v6 = vmul.f32 %v1594_v4, %v1592_v2 }
 0x722   :  { %v662_v8 = vrot.slane %v654_v6, 6 }
 0x724   :  { %663 = vrot.lane.b32.xlu1 %v662_v8, %s1706_s4 }
 0x786   :  { %v658_v12 = vpop.permute.xlu0 %657 }
 0x787   :  { %v660_v14 = vsel %vm154_vm6, %v658_v12, %v2039_v38  ;;  %v2154_v12 = vld [vmem:[%s2344_s1 + $0xa] sm:$0x3] }
 0x788   :  { %763 = vrot.lane.b32.xlu1 %v660_v14, %s1706_s4  ;;  %vm156_vm8 = vcmp.ne.f32.partialorder %v2154_v12, 0.0 }
 0x796   :  { %v664_v16 = vpop.permute.xlu1 %663 }
 0x797   :  { %v666_v27 = vsel %vm154_vm6, %v664_v16, %v2046_v41 }
 0x798   :  { %668 = vst.msk [vmem:[#allocation3 + $0x6] sm:$0x3] %vm286_vm2, %v666_v27  ;;  %670 = vst.msk [vmem:[#allocation4 + $0x8] sm:$0x3] %vm286_vm2, %v666_v27  ;;  %1496 = vmatmul.mubr.msk.f32.vlgmr.msra.gmra.mxu1 %vm177_vm3, %v666_v27 }
 0x799   :  { %938 = vmatpush1.msra.mxu1 %v1776_v3  ;;  %985 = vmatprep.mubr.f32.mxu1 %v1705_v18 }
 0x79a   :  { %939 = vmatprep.subr.mxu1 %v1784_v5 }
 0x79b   :  { %940 = vmatpush1.msra.mxu1 %v1793_v7 }
 0x79c   :  { %941 = vmatprep.subr.mxu1 %v1802_v9 }
 0x79d   :  { %942 = vmatpush1.msra.mxu1 %v1810_v11 }
 0x79e   :  { %943 = vmatprep.subr.mxu1 %v1819_v13 }
 0x79f   :  { %944 = vmatpush1.msra.mxu1 %v1829_v15 }
 0x7a0   :  { %945 = vmatprep.subr.mxu1 %v1838_v17 }
 0x7a1   :  { %946 = vmatpush1.msra.mxu1 %v1844_v19 }
 0x7a2   :  { %947 = vmatprep.subr.mxu1 %v1851_v20 }
 0x7a3   :  { %948 = vmatpush1.msra.mxu1 %v1857_v21 }
 0x7a4   :  { %949 = vmatprep.subr.mxu1 %v1864_v22 }
 0x7a5   :  { %950 = vmatpush1.msra.mxu1 %v1871_v23 }
 0x7a6   :  { %951 = vmatprep.subr.mxu1 %v1878_v24 }
 0x7a7   :  { %952 = vmatpush1.msra.mxu1 %v1885_v25 }
 0x7a8   :  { %1520 = vmatprep.subr.mxu1 %v1705_v18 }
 0x7fa   :  { %v764_v43 = vpop.permute.xlu1 %763 }
 0x858   :  { %v742_v29 = vpop.f32.mrf.mxu1 }
 0x859   :  { %v747_v30 = vadd.f32 %v742_v29, %v671_v28 }
 0x85a   :  { %v744_v34 = vpop.f32.mrf.mxu1 }
 0x85b   :  { %v1497_v33 = vmul.f32 -1.442695, %v747_v30  ;;  %v748_v31 = vadd.f32 %v744_v34, %v672_v35  ;;  %v916_v34 = vld [vmem:[#allocation2 + $0x18] sm:$0x30] }
 0x85d   :  { %1595 = vpow2.f32 %v1497_v33  ;;  %v1498_v41 = vmul.f32 -1.442695, %v748_v31 }
 0x85e   :  { %1597 = vtanh.f32 %v748_v31 }
 0x86a   :  { %v1596_v36 = vpop.eup %1595 }
 0x86b   :  { %v752_v32 = vadd.f32 1.0, %v1596_v36  ;;  %v1598_v38 = vpop.eup %1597 }
 0x86d   :  { %1599 = vrcp.f32 %v752_v32 }
 0x86e   :  { %1601 = vpow2.f32 %v1498_v41 }
 0x87a   :  { %v1600_v39 = vpop.eup %1599 }
 0x87b   :  { %v767_v40 = vmul.f32 %v1600_v39, %v1598_v38  ;;  %v1602_v42 = vpop.eup %1601  ;;  %v766_v45 = vmul.f32 %v1600_v39, %v764_v43  ;;  %v917_v38 = vld [vmem:[#allocation2 + $0x8] sm:$0x30] }
 0x87c   :  { %v759_v44 = vadd.f32 1.0, %v1602_v42 }
 0x87d   :  { %769 = vrot.lane.b32.xlu0 %v767_v40, %s1706_s4 }
 0x87e   :  { %1603 = vrcp.f32 %v759_v44 }
 0x88b   :  { %v1604_v48 = vpop.eup %1603 }
 0x8ef   :  { %v770_v46 = vpop.permute.xlu0 %769 }
 0x8f0   :  { %v772_v47 = vadd.f32 %v770_v46, %v766_v45 }
 0x8f2   :  { %1605 = vtanh.f32 %v772_v47  ;;  %776 = vrot.lane.b32.xlu0 %v772_v47, %s1706_s4 }
 0x8ff   :  { %v1606_v50 = vpop.eup %1605 }
 0x900   :  { %v774_v51 = vmul.f32 %v1606_v50, %v1604_v48 }
 0x902   :  { %781 = vrot.lane.b32.xlu1 %v774_v51, %s1706_s4 }
 0x964   :  { %v777_v53 = vpop.permute.xlu0 %776 }
 0x965   :  { %v2118_v54 = vsel %vm155_vm7, %v777_v53, %v660_v14 }
 0x966   :  { %v887_v55 = vrot.slane %v2118_v54, 6 }
 0x968   :  { %888 = vrot.lane.b32.xlu1 %v887_v55, %s1706_s4 }
 0x974   :  { %v782_v56 = vpop.permute.xlu1 %781 }
 0x975   :  { %v2124_v1 = vsel %vm155_vm7, %v782_v56, %v666_v27 }
 0x976   :  { %786 = vst.msk [vmem:[#allocation3 + $0x8] sm:$0x3] %vm286_vm2, %v2124_v1  ;;  %788 = vst.msk [vmem:[#allocation4 + $0x6] sm:$0x3] %vm286_vm2, %v2124_v1  ;;  %1499 = vmatmul.mubr.msk.f32.vlgmr.msra.gmra.mxu0 %vm177_vm3, %v2124_v1 }
 0x977   :  { %1065 = vmatpush1.msra.mxu0 %v1776_v3  ;;  %1112 = vmatprep.mubr.f32.mxu0 %v1705_v18 }
 0x978   :  { %1066 = vmatprep.subr.mxu0 %v1784_v5 }
 0x979   :  { %1067 = vmatpush1.msra.mxu0 %v1793_v7  ;;  %v789_v7 = vld [vmem:[#allocation2 + $0x18] sm:$0xc] }
 0x97a   :  { %1068 = vmatprep.subr.mxu0 %v1802_v9 }
 0x97b   :  { %1069 = vmatpush1.msra.mxu0 %v1810_v11 }
 0x97c   :  { %1070 = vmatprep.subr.mxu0 %v1819_v13 }
 0x97d   :  { %1071 = vmatpush1.msra.mxu0 %v1829_v15 }
 0x97e   :  { %1072 = vmatprep.subr.mxu0 %v1838_v17  ;;  %v790_v17 = vld [vmem:[#allocation2 + $0x8] sm:$0xc] }
 0x97f   :  { %1073 = vmatpush1.msra.mxu0 %v1844_v19 }
 0x980   :  { %1074 = vmatprep.subr.mxu0 %v1851_v20 }
 0x981   :  { %1075 = vmatpush1.msra.mxu0 %v1857_v21 }
 0x982   :  { %1076 = vmatprep.subr.mxu0 %v1864_v22 }
 0x983   :  { %1077 = vmatpush1.msra.mxu0 %v1871_v23 }
 0x984   :  { %1078 = vmatprep.subr.mxu0 %v1878_v24 }
 0x985   :  { %1079 = vmatpush1.msra.mxu0 %v1885_v25 }
 0x9da   :  { %v889_v58 = vpop.permute.xlu1 %888 }
 0xa36   :  { %v860_v3 = vpop.f32.mrf.mxu0 }
 0xa37   :  { %v867_v5 = vrot.slane %v860_v3, 6 }
 0xa38   :  { %v862_v13 = vpop.f32.mrf.mxu0 }
 0xa39   :  { %v871_v9 = vadd.f32 %v867_v5, %v789_v7  ;;  %v868_v15 = vrot.slane %v862_v13, 6  ;;  %v2173_v5 = vld [vmem:[%s2344_s1 + $0xc] sm:$0x3] }
 0xa3a   :  { %vm157_vm9 = vcmp.ne.f32.partialorder %v2173_v5, 0.0 }
 0xa3b   :  { %v1500_v11 = vmul.f32 -1.442695, %v871_v9  ;;  %v872_v19 = vadd.f32 %v868_v15, %v790_v17 }
 0xa3d   :  { %1607 = vpow2.f32 %v1500_v11  ;;  %v1501_v24 = vmul.f32 -1.442695, %v872_v19 }
 0xa3e   :  { %1609 = vtanh.f32 %v872_v19 }
 0xa4a   :  { %v1608_v20 = vpop.eup %1607 }
 0xa4b   :  { %v876_v21 = vadd.f32 1.0, %v1608_v20  ;;  %v1610_v22 = vpop.eup %1609  ;;  %v1043_v20 = vld [vmem:[#allocation2 + $0x18] sm:$0xc0] }
 0xa4d   :  { %1611 = vrcp.f32 %v876_v21 }
 0xa4e   :  { %1613 = vpow2.f32 %v1501_v24  ;;  %v1044_v24 = vld [vmem:[#allocation2 + $0x8] sm:$0xc0] }
 0xa5a   :  { %v1612_v23 = vpop.eup %1611 }
 0xa5b   :  { %v892_v57 = vmul.f32 %v1612_v23, %v1610_v22  ;;  %v1614_v25 = vpop.eup %1613  ;;  %v891_v61 = vmul.f32 %v1612_v23, %v889_v58 }
 0xa5c   :  { %v883_v60 = vadd.f32 1.0, %v1614_v25 }
 0xa5d   :  { %894 = vrot.lane.b32.xlu0 %v892_v57, %s1706_s4 }
 0xa5e   :  { %1615 = vrcp.f32 %v883_v60 }
 0xa6b   :  { %v1616_v2 = vpop.eup %1615 }
 0xacf   :  { %v895_v62 = vpop.permute.xlu0 %894 }
 0xad0   :  { %v897_v63 = vadd.f32 %v895_v62, %v891_v61 }
 0xad2   :  { %1617 = vtanh.f32 %v897_v63  ;;  %v901_v0 = vrot.slane %v897_v63, 2 }
 0xad4   :  { %902 = vrot.lane.b32.xlu0 %v901_v0, %s1706_s4  ;;  %v2191_v0 = vand.u32 127, %v45_v26 }
 0xad6   :  { %vm1165_vm10 = vcmp.lt.s32.totalorder %v2191_v0, 32 }
 0xadf   :  { %v1618_v4 = vpop.eup %1617 }
 0xae0   :  { %v899_v6 = vmul.f32 %v1618_v4, %v1616_v2  ;;  %v1168_v4 = vld [vmem:[#allocation3 + $0x4] sm:$0x3] }
 0xae2   :  { %v907_v8 = vrot.slane %v899_v6, 2 }
 0xae4   :  { %908 = vrot.lane.b32.xlu1 %v907_v8, %s1706_s4  ;;  %v1177_v8 = vld [vmem:[#allocation4 + $0x6] sm:$0x3] }
 0xb46   :  { %v903_v14 = vpop.permute.xlu0 %902 }
 0xb47   :  { %v905_v16 = vsel %vm156_vm8, %v903_v14, %v2118_v54  ;;  %v1508_v14 = vld [vmem:[%s2348_s5] ss:$0 sm:$0xff] }
 0xb48   :  { %v1014_v27 = vrot.slane %v905_v16, 4 }
 0xb4a   :  { %1015 = vrot.lane.b32.xlu1 %v1014_v27, %s1706_s4  ;;  %v1169_v27 = vld [vmem:[#allocation3 + $0x6] sm:$0x3] }
 0xb4b   :  { %v2204_v26 = vsel %vm1165_vm10, %v1169_v27, %v1177_v8 }
 0xb56   :  { %v909_v28 = vpop.permute.xlu1 %908 }
 0xb57   :  { %v911_v29 = vsel %vm156_vm8, %v909_v28, %v2124_v1 }
 0xb58   :  { %913 = vst.msk [vmem:[#allocation3 + $0xa] sm:$0x3] %vm286_vm2, %v911_v29  ;;  %915 = vst.msk [vmem:[#allocation4 + $0x4] sm:$0x3] %vm286_vm2, %v911_v29  ;;  %1502 = vmatmul.mubr.msk.f32.vlgmr.msra.gmra.mxu1 %vm177_vm3, %v911_v29 }
 0xb59   :  { %1536 = vmatprep.mubr.msk.f32.mxu1 %vm1708_vm13, %v1705_v18 }
 0xb5f   :  { %v1176_v2 = vld [vmem:[#allocation4 + $0x4] sm:$0x3]  ;;  %v1171_v28 = vld [vmem:[#allocation3 + $0xa] sm:$0x3] }
 0xb60   :  { %v2196_v6 = vsel %vm1165_vm10, %v1168_v4, %v1176_v2  ;;  %v1707_v2 = vmov 0  }
 0xb61   :  { %1546 = vset.pattern.permute.xlu0 %v1707_v2  ;;  %1545 = vset.pattern.permute.xlu1 %v1707_v2 }
 0xbbc   :  { %v1016_v47 = vpop.permute.xlu1 %1015 }
 0xc18   :  { %v987_v30 = vpop.f32.mrf.mxu1 }
 0xc19   :  { %v994_v33 = vrot.slane %v987_v30, 4  ;;  %v1200_v30 = vmul.f32 %v1508_v14, %v2204_v26 }
 0xc1a   :  { %v989_v36 = vpop.f32.mrf.mxu1 }
 0xc1b   :  { %v998_v35 = vadd.f32 %v994_v33, %v916_v34  ;;  %v995_v32 = vrot.slane %v989_v36, 4  ;;  %v1179_v33 = vld [vmem:[#allocation4 + $0xa] sm:$0x3] }
 0xc1c   :  { %v2210_v34 = vsel %vm1165_vm10, %v1171_v28, %v1179_v33 }
 0xc1d   :  { %v1503_v31 = vmul.f32 -1.442695, %v998_v35  ;;  %v999_v39 = vadd.f32 %v995_v32, %v917_v38  ;;  %v1214_v35 = vsel %vm286_vm2, %v1200_v30, 0.0 }
 0xc1f   :  { %1619 = vpow2.f32 %v1503_v31  ;;  %v1504_v45 = vmul.f32 -1.442695, %v999_v39  ;;  %v1202_v31 = vmul.f32 %v1508_v14, %v2210_v34 }
 0xc20   :  { %1621 = vtanh.f32 %v999_v39 }
 0xc21   :  { %v1220_v36 = vsel %vm286_vm2, %v1202_v31, 0.0 }
 0xc2c   :  { %v1620_v40 = vpop.eup %1619 }
 0xc2d   :  { %v1003_v41 = vadd.f32 1.0, %v1620_v40  ;;  %v1622_v42 = vpop.eup %1621 }
 0xc2f   :  { %1623 = vrcp.f32 %v1003_v41 }
 0xc30   :  { %1625 = vpow2.f32 %v1504_v45 }
 0xc3c   :  { %v1624_v43 = vpop.eup %1623 }
 0xc3d   :  { %v1019_v44 = vmul.f32 %v1624_v43, %v1622_v42  ;;  %v1626_v46 = vpop.eup %1625  ;;  %v1018_v50 = vmul.f32 %v1624_v43, %v1016_v47 }
 0xc3e   :  { %v1010_v48 = vadd.f32 1.0, %v1626_v46 }
 0xc3f   :  { %1021 = vrot.lane.b32.xlu0 %v1019_v44, %s1706_s4 }
 0xc40   :  { %1627 = vrcp.f32 %v1010_v48 }
 0xc4d   :  { %v1628_v55 = vpop.eup %1627 }
 0xcb1   :  { %v1022_v51 = vpop.permute.xlu0 %1021 }
 0xcb2   :  { %v1024_v53 = vadd.f32 %v1022_v51, %v1018_v50  ;;  %v1167_v50 = vld [vmem:[#allocation3 + $0x2] sm:$0x3] }
 0xcb4   :  { %1629 = vtanh.f32 %v1024_v53  ;;  %v1028_v54 = vrot.slane %v1024_v53, 4  ;;  %v1170_v53 = vld [vmem:[#allocation3 + $0x8] sm:$0x3] }
 0xcb6   :  { %1029 = vrot.lane.b32.xlu0 %v1028_v54, %s1706_s4 }
 0xcc1   :  { %v1630_v56 = vpop.eup %1629 }
 0xcc2   :  { %v1026_v1 = vmul.f32 %v1630_v56, %v1628_v55  ;;  %v1178_v55 = vld [vmem:[#allocation4 + $0x8] sm:$0x3] }
 0xcc3   :  { %v2223_v56 = vsel %vm1165_vm10, %v1170_v53, %v1178_v55 }
 0xcc4   :  { %v1034_v3 = vrot.slane %v1026_v1, 4 }
 0xcc6   :  { %1035 = vrot.lane.b32.xlu1 %v1034_v3, %s1706_s4 }
 0xd28   :  { %v1030_v7 = vpop.permute.xlu0 %1029 }
 0xd29   :  { %v1032_v9 = vsel %vm157_vm9, %v1030_v7, %v905_v16  ;;  %v1199_v16 = vmul.f32 %v1508_v14, %v2196_v6  ;;  %v1201_v7 = vmul.f32 %v1508_v14, %v2223_v56 }
 0xd2a   :  { %v1141_v11 = vrot.slane %v1032_v9, 2  ;;  %v1180_v9 = vld [vmem:[#allocation4 + $0xc] sm:$0x3] }
 0xd2c   :  { %1142 = vrot.lane.b32.xlu1 %v1141_v11, %s1706_s4 }
 0xd38   :  { %v1036_v13 = vpop.permute.xlu1 %1035 }
 0xd39   :  { %v2181_v15 = vsel %vm157_vm9, %v1036_v13, %v911_v29  ;;  %v1211_v29 = vsel %vm286_vm2, %v1199_v16, 0.0  ;;  %v1217_v13 = vsel %vm286_vm2, %v1201_v7, 0.0 }
 0xd3a   :  { %1040 = vst.msk [vmem:[#allocation3 + $0xc] sm:$0x3] %vm286_vm2, %v2181_v15  ;;  %1042 = vst.msk [vmem:[#allocation4 + $0x2] sm:$0x3] %vm286_vm2, %v2181_v15  ;;  %1505 = vmatmul.mubr.msk.f32.vlgmr.msra.gmra.mxu0 %vm177_vm3, %v2181_v15 }
 0xd41   :  { %v1175_v48 = vld [vmem:[#allocation4 + $0x2] sm:$0x3]  ;;  %v1172_v1 = vld [vmem:[#allocation3 + $0xc] sm:$0x3] }
 0xd42   :  { %v2218_v51 = vsel %vm1165_vm10, %v1167_v50, %v1175_v48  ;;  %v2229_v11 = vsel %vm1165_vm10, %v1172_v1, %v1180_v9 }
 0xd43   :  { %v1198_v54 = vmul.f32 %v1508_v14, %v2218_v51 }
 0xd45   :  { %v1208_v3 = vsel %vm286_vm2, %v1198_v54, 0.0 }
 0xd9e   :  { %v1143_v39 = vpop.permute.xlu1 %1142 }
 0xdfa   :  { %v1114_v17 = vpop.f32.mrf.mxu0 }
 0xdfb   :  { %v1121_v19 = vrot.slane %v1114_v17, 2  ;;  %v1203_v17 = vmul.f32 %v1508_v14, %v2229_v11 }
 0xdfc   :  { %v1116_v23 = vpop.f32.mrf.mxu0 }
 0xdfd   :  { %v1125_v21 = vadd.f32 %v1121_v19, %v1043_v20  ;;  %v1122_v57 = vrot.slane %v1116_v23, 2  ;;  %v1223_v19 = vsel %vm286_vm2, %v1203_v17, 0.0  ;;  %v150_v20 = vld [vmem:[%s2344_s1 + $0xe] sm:$0x3]  ;;  %v1166_v23 = vld [vmem:[#allocation3] sm:$0x3] }
 0xdfe   :  { %vm158_vm11 = vcmp.ne.f32.partialorder %v150_v20, 0.0 }
 0xdff   :  { %v1506_v22 = vmul.f32 -1.442695, %v1125_v21  ;;  %v1126_v25 = vadd.f32 %v1122_v57, %v1044_v24 }
 0xe01   :  { %1631 = vpow2.f32 %v1506_v22  ;;  %v1507_v32 = vmul.f32 -1.442695, %v1126_v25 }
 0xe02   :  { %1633 = vtanh.f32 %v1126_v25  ;;  %v1181_v25 = vld [vmem:[#allocation4 + $0xe] sm:$0x3] }
 0xe0e   :  { %v1632_v58 = vpop.eup %1631 }
 0xe0f   :  { %v1130_v60 = vadd.f32 1.0, %v1632_v58  ;;  %v1634_v61 = vpop.eup %1633 }
 0xe11   :  { %1635 = vrcp.f32 %v1130_v60 }
 0xe12   :  { %1637 = vpow2.f32 %v1507_v32 }
 0xe1e   :  { %v1636_v62 = vpop.eup %1635 }
 0xe1f   :  { %v1146_v63 = vmul.f32 %v1636_v62, %v1634_v61  ;;  %v1638_v38 = vpop.eup %1637  ;;  %v1145_v41 = vmul.f32 %v1636_v62, %v1143_v39 }
 0xe20   :  { %v1137_v40 = vadd.f32 1.0, %v1638_v38 }
 0xe21   :  { %1148 = vrot.lane.b32.xlu0 %v1146_v63, %s1706_s4 }
 0xe22   :  { %1639 = vrcp.f32 %v1137_v40 }
 0xe2f   :  { %v1640_v44 = vpop.eup %1639 }
 0xe40   :  { %1212 = vadd.xlane.f32.xlu0 %v1211_v29 }
 0xe44   :  { %1215 = vadd.xlane.f32.xlu0 %v1214_v35 }
 0xe48   :  { %1221 = vadd.xlane.f32.xlu0 %v1220_v36 }
 0xe93   :  { %v1149_v42 = vpop.permute.xlu0 %1148 }
 0xe94   :  { %v1151_v43 = vadd.f32 %v1149_v42, %v1145_v41 }
 0xe96   :  { %1641 = vtanh.f32 %v1151_v43 }
 0xea3   :  { %v1642_v45 = vpop.eup %1641 }
 0xea4   :  { %v1153_v46 = vmul.f32 %v1642_v45, %v1640_v44 }
 0xea6   :  { %v1155_v47 = vrot.slane %v1153_v46, 6 }
 0xea8   :  { %1156 = vrot.lane.b32.xlu1 %v1155_v47, %s1706_s4 }
 0xec9   :  { %v1213_v4 = vpop.xlane.xlu0 %1212 }
 0xeca   :  { %v1231_v36 = vsel %vm153_vm5, %v1213_v4, -1000000.0 }
 0xecb   :  { %v1240_v41 = vsel %vm1237_vm12, %v1231_v36, -inf }
 0xecc   :  { %1209 = vadd.xlane.f32.xlu1 %v1208_v3 }
 0xecd   :  { %v1216_v16 = vpop.xlane.xlu0 %1215 }
 0xece   :  { %v1232_v32 = vsel %vm154_vm6, %v1216_v16, -1000000.0 }
 0xecf   :  { %v1241_v37 = vsel %vm1237_vm12, %v1232_v32, -inf }
 0xed0   :  { %1218 = vadd.xlane.f32.xlu1 %v1217_v13 }
 0xed1   :  { %v1222_v0 = vpop.xlane.xlu0 %1221 }
 0xed2   :  { %v1234_v49 = vsel %vm156_vm8, %v1222_v0, -1000000.0 }
 0xed3   :  { %v1244_v10 = vsel %vm1237_vm12, %v1234_v49, -inf }
 0xed4   :  { %1224 = vadd.xlane.f32.xlu1 %v1223_v19 }
 0xf1a   :  { %v1157_v21 = vpop.permute.xlu1 %1156 }
 0xf1b   :  { %v1159_v22 = vsel %vm158_vm11, %v1157_v21, %v2181_v15 }
 0xf1c   :  { %1161 = vst.msk [vmem:[#allocation3 + $0xe] sm:$0x3] %vm286_vm2, %v1159_v22  ;;  %1162 = vst.msk [vmem:[#allocation4] sm:$0x3] %vm286_vm2, %v1159_v22 }
 0xf23   :  { %v1174_v57 = vld [vmem:[#allocation4] sm:$0x3]  ;;  %v1173_v24 = vld [vmem:[#allocation3 + $0xe] sm:$0x3] }
 0xf24   :  { %v2243_v58 = vsel %vm1165_vm10, %v1166_v23, %v1174_v57  ;;  %v2247_v60 = vsel %vm1165_vm10, %v1173_v24, %v1181_v25 }
 0xf25   :  { %v1197_v61 = vmul.f32 %v1508_v14, %v2243_v58  ;;  %v1204_v62 = vmul.f32 %v1508_v14, %v2247_v60 }
 0xf27   :  { %v1205_v15 = vsel %vm286_vm2, %v1197_v61, 0.0  ;;  %v1226_v63 = vsel %vm286_vm2, %v1204_v62, 0.0 }
 0xf28   :  { %1206 = vadd.xlane.f32.xlu0 %v1205_v15 }
 0xf2c   :  { %1227 = vadd.xlane.f32.xlu0 %v1226_v63 }
 0xf55   :  { %v1210_v8 = vpop.xlane.xlu1 %1209 }
 0xf56   :  { %v1230_v29 = vsel %vm152_vm4, %v1210_v8, -1000000.0 }
 0xf57   :  { %v1239_v52 = vsel %vm1237_vm12, %v1230_v29, -inf }
 0xf58   :  { %v1245_v12 = vmax.f32 %v1239_v52, %v1244_v10  ;;  %v1370_v10 = vld [vmem:[%s2349_s6 + $0x30] sm:$0xff] }
 0xf59   :  { %v1219_v27 = vpop.xlane.xlu1 %1218 }
 0xf5a   :  { %v1233_v14 = vsel %vm155_vm7, %v1219_v27, -1000000.0 }
 0xf5b   :  { %v1242_v38 = vsel %vm1237_vm12, %v1233_v14, -inf }
 0xf5d   :  { %v1225_v28 = vpop.xlane.xlu1 %1224 }
 0xf5e   :  { %v1235_v33 = vsel %vm157_vm9, %v1225_v28, -1000000.0 }
 0xf5f   :  { %v1246_v5 = vsel %vm1237_vm12, %v1235_v33, -inf }
 0xf60   :  { %v1247_v43 = vmax.f32 %v1240_v41, %v1246_v5  ;;  %v1371_v41 = vld [vmem:[%s2349_s6 + $0x38] sm:$0xff] }
 0xf61   :  { %1521 = vmatpush3.msra.mxu1 %v1371_v41 }
 0xf62   :  { %1522 = vmatprep.subr.mxu1 %v1705_v18 }
 0xf63   :  { %1523 = vmatpush3.msra.mxu1 %v1370_v10 }
 0xf64   :  { %1524 = vmatprep.subr.mxu1 %v1705_v18 }
 0xfb1   :  { %v1207_v30 = vpop.xlane.xlu0 %1206 }
 0xfb2   :  { %v1229_v35 = vsel %vm151_vm1, %v1207_v30, -1000000.0 }
 0xfb3   :  { %v1238_v31 = vsel %vm1237_vm12, %v1229_v35, -inf }
 0xfb4   :  { %v1243_v59 = vmax.f32 %v1238_v31, %v1242_v38 }
 0xfb5   :  { %v1228_v39 = vpop.xlane.xlu0 %1227 }
 0xfb6   :  { %v1236_v40 = vsel %vm158_vm11, %v1228_v39, -1000000.0  ;;  %v1250_v45 = vmax.f32 %v1243_v59, %v1245_v12 }
 0xfb7   :  { %v1248_v42 = vsel %vm1237_vm12, %v1236_v40, -inf }
 0xfb8   :  { %v1249_v44 = vmax.f32 %v1241_v37, %v1248_v42  ;;  %v1369_v42 = vld [vmem:[%s2349_s6 + $0x28] sm:$0xff] }
 0xfb9   :  { %1525 = vmatpush3.msra.mxu1 %v1369_v42 }
 0xfba   :  { %v1251_v46 = vmax.f32 %v1247_v43, %v1249_v44  ;;  %1526 = vmatprep.subr.mxu1 %v1705_v18  ;;  %v1368_v43 = vld [vmem:[%s2349_s6 + $0x20] sm:$0xff]  ;;  %v1367_v44 = vld [vmem:[%s2349_s6 + $0x18] sm:$0xff] }
 0xfbb   :  { %1527 = vmatpush3.msra.mxu1 %v1368_v43 }
 0xfbc   :  { %v1252_v47 = vmax.f32 %v1250_v45, %v1251_v46  ;;  %1528 = vmatprep.subr.mxu1 %v1705_v18  ;;  %v1366_v46 = vld [vmem:[%s2349_s6 + $0x10] sm:$0xff] }
 0xfbd   :  { %1529 = vmatpush3.msra.mxu1 %v1367_v44 }
 0xfbe   :  { %v1253_v48 = vsub.f32 %v1229_v35, %v1252_v47  ;;  %v1254_v50 = vsub.f32 %v1230_v29, %v1252_v47  ;;  %v1255_v53 = vsub.f32 %v1231_v36, %v1252_v47  ;;  %v1256_v54 = vsub.f32 %v1232_v32, %v1252_v47  ;;  %1530 = vmatprep.subr.mxu1 %v1705_v18 }
 0xfbf   :  { %v1257_v55 = vsub.f32 %v1233_v14, %v1252_v47  ;;  %v1258_v9 = vsub.f32 %v1234_v49, %v1252_v47  ;;  %v1259_v17 = vsub.f32 %v1235_v33, %v1252_v47  ;;  %v1260_v20 = vsub.f32 %v1236_v40, %v1252_v47  ;;  %v1365_v47 = vld [vmem:[%s2349_s6 + $0x8] sm:$0xff]  ;;  %1531 = vmatpush3.msra.mxu1 %v1366_v46 }
 0xfc0   :  { %v1261_v1 = vmul.f32 1.442695, %v1253_v48  ;;  %v1263_v3 = vmul.f32 1.442695, %v1254_v50  ;;  %v1265_v7 = vmul.f32 1.442695, %v1255_v53  ;;  %1532 = vmatprep.subr.mxu1 %v1705_v18 }
 0xfc1   :  { %v1267_v13 = vmul.f32 1.442695, %v1256_v54  ;;  %v1269_v19 = vmul.f32 1.442695, %v1257_v55  ;;  %v1271_v21 = vmul.f32 1.442695, %v1258_v9  ;;  %1533 = vmatpush3.msra.mxu1 %v1365_v47 }
 0xfc2   :  { %1643 = vpow2.f32 %v1261_v1  ;;  %v1273_v22 = vmul.f32 1.442695, %v1259_v17  ;;  %v1275_v23 = vmul.f32 1.442695, %v1260_v20  ;;  %v1364_v48 = vld [vmem:[%s2349_s6] sm:$0xff]  ;;  %1534 = vmatprep.subr.mxu1 %v1705_v18  ;;  %s1709_s6 = smov [#allocation7]  }
 0xfc3   :  { %1645 = vpow2.f32 %v1263_v3  ;;  %1535 = vmatpush3.msra.mxu1 %v1364_v48  ;;  %s1471_s24 = sshll.u32 %s1709_s6, 4  ;;  %s1472_s24 = int_to_ptr.vmem [resolvable:$true] %s1471_s24 }
 0xfc4   :  { %1647 = vpow2.f32 %v1265_v7  ;;  %s1661_s25 = scalar_lea.vmem %s1472_s24, 32  ;;  %p1666_p1 = scmp.lt.s32.totalorder %s1472_s24, %s1472_s24 }
 0xfc5   :  { %1649 = vpow2.f32 %v1267_v13  ;;  %p1662_p0 = scmp.ne.s32.totalorder %s1472_s24, %s1661_s25  ;;  %p1667_p2 = scmp.lt.s32.totalorder %s1661_s25, %s1661_s25 }
 0xfc6   :  { %1651 = vpow2.f32 %v1269_v19 }
 0xfc7   :  { %1653 = vpow2.f32 %v1271_v21  ;;  %p1668_p3 = por %p1667_p2, %p1666_p1 }
 0xfc8   :  { %1655 = vpow2.f32 %v1273_v22 }
 0xfc9   :  { %1657 = vpow2.f32 %v1275_v23  ;;  %p1669_p4 = pnand %p1668_p3, %p1662_p0 }
 0xfcf   :  { %v1644_v57 = vpop.eup %1643 }
 0xfd0   :  { %v1646_v24 = vpop.eup %1645  ;;  %v1277_v25 = vsel %vm1237_vm12, %v1644_v57, 0.0 }
 0xfd1   :  { %v1648_v61 = vpop.eup %1647  ;;  %v1278_v15 = vsel %vm1237_vm12, %v1646_v24, 0.0 }
 0xfd2   :  { %v1650_v62 = vpop.eup %1649  ;;  %v1279_v63 = vadd.f32 %v1278_v15, %v1277_v25  ;;  %v1280_v2 = vsel %vm1237_vm12, %v1648_v61, 0.0 }
 0xfd3   :  { %v1652_v4 = vpop.eup %1651  ;;  %v1282_v16 = vsel %vm1237_vm12, %v1650_v62, 0.0 }
 0xfd4   :  { %v1281_v8 = vadd.f32 %v1280_v2, %v1279_v63  ;;  %v1654_v27 = vpop.eup %1653  ;;  %v1284_v28 = vsel %vm1237_vm12, %v1652_v4, 0.0 }
 0xfd5   :  { %v1656_v29 = vpop.eup %1655  ;;  %v1286_v14 = vsel %vm1237_vm12, %v1654_v27, 0.0 }
 0xfd6   :  { %v1283_v0 = vadd.f32 %v1282_v16, %v1281_v8  ;;  %v1658_v33 = vpop.eup %1657  ;;  %v1288_v31 = vsel %vm1237_vm12, %v1656_v29, 0.0 }
 0xfd7   :  { %v1290_v32 = vsel %vm1237_vm12, %v1658_v33, 0.0 }
 0xfd8   :  { %v1285_v30 = vadd.f32 %v1284_v28, %v1283_v0 }
 0xfda   :  { %v1287_v35 = vadd.f32 %v1286_v14, %v1285_v30 }
 0xfdc   :  { %v1289_v36 = vadd.f32 %v1288_v31, %v1287_v35 }
 0xfde   :  { %v1291_v49 = vadd.f32 %v1290_v32, %v1289_v36 }
 0xfe0   :  { %1659 = vrcp.f32 %v1291_v49 }
 0xfed   :  { %v1660_v52 = vpop.eup %1659 }
 0xfee   :  { %v1294_v38 = vmul.f32 %v1660_v52, %v1646_v24  ;;  %v1293_v5 = vmul.f32 %v1660_v52, %v1644_v57  ;;  %v1295_v39 = vmul.f32 %v1660_v52, %v1648_v61  ;;  %v1296_v59 = vmul.f32 %v1660_v52, %v1650_v62 }
 0xfef   :  { %v1297_v40 = vmul.f32 %v1660_v52, %v1652_v4  ;;  %v1298_v37 = vmul.f32 %v1660_v52, %v1654_v27  ;;  %v1299_v12 = vmul.f32 %v1660_v52, %v1656_v29  ;;  %v1300_v45 = vmul.f32 %v1660_v52, %v1658_v33 }
 0xff0   :  { %1308 = vperm.xlu0 %1546, %v1294_v38   ;;  %1303 = vperm.xlu1 %1545, %v1293_v5  }
 0xff4   :  { %1313 = vperm.xlu1 %1545, %v1295_v39  }
 0xff8   :  { %1318 = vperm.xlu1 %1545, %v1296_v59  }
 0xffc   :  { %1323 = vperm.xlu1 %1545, %v1297_v40  }
0x1000   :  { %1328 = vperm.xlu1 %1545, %v1298_v37  }
0x1004   :  { %1333 = vperm.xlu1 %1545, %v1299_v12  }
0x1008   :  { %1338 = vperm.xlu1 %1545, %v1300_v45  }
0x106b   :  { %v1304_v50 = vpop.permute.xlu1 %1303  ;;  %v1309_v54 = vpop.permute.xlu0 %1308 }
0x106c   :  { %v1342_v1 = vmul.f32 %v1309_v54, %v2218_v51  ;;  %v1341_v3 = vmul.f32 %v1304_v50, %v2243_v58 }
0x106e   :  { %v1350_v13 = vsel %vm286_vm2, %v1342_v1, 0.0  ;;  %v1349_v17 = vsel %vm286_vm2, %v1341_v3, 0.0 }
0x106f   :  { %v1314_v53 = vpop.permute.xlu1 %1313  ;;  %v1351_v21 = vadd.f32 %v1350_v13, %v1349_v17 }
0x1070   :  { %v1343_v7 = vmul.f32 %v1314_v53, %v2196_v6 }
0x1072   :  { %v1352_v18 = vsel %vm286_vm2, %v1343_v7, 0.0 }
0x1073   :  { %v1319_v55 = vpop.permute.xlu1 %1318  ;;  %v1353_v58 = vadd.f32 %v1352_v18, %v1351_v21 }
0x1074   :  { %v1344_v19 = vmul.f32 %v1319_v55, %v2204_v26 }
0x1076   :  { %v1354_v23 = vsel %vm286_vm2, %v1344_v19, 0.0 }
0x1077   :  { %v1324_v9 = vpop.permute.xlu1 %1323  ;;  %v1355_v57 = vadd.f32 %v1354_v23, %v1353_v58 }
0x1078   :  { %v1345_v20 = vmul.f32 %v1324_v9, %v2223_v56 }
0x107a   :  { %v1356_v6 = vsel %vm286_vm2, %v1345_v20, 0.0 }
0x107b   :  { %v1329_v22 = vpop.permute.xlu1 %1328  ;;  %v1357_v26 = vadd.f32 %v1356_v6, %v1355_v57 }
0x107c   :  { %v1346_v51 = vmul.f32 %v1329_v22, %v2210_v34 }
0x107e   :  { %v1358_v25 = vsel %vm286_vm2, %v1346_v51, 0.0 }
0x107f   :  { %v1334_v24 = vpop.permute.xlu1 %1333  ;;  %v1359_v62 = vadd.f32 %v1358_v25, %v1357_v26 }
0x1080   :  { %v1347_v61 = vmul.f32 %v1334_v24, %v2229_v11 }
0x1082   :  { %v1360_v15 = vsel %vm286_vm2, %v1347_v61, 0.0 }
0x1083   :  { %v1339_v56 = vpop.permute.xlu1 %1338  ;;  %v1361_v2 = vadd.f32 %v1360_v15, %v1359_v62 }
0x1084   :  { %v1348_v63 = vmul.f32 %v1339_v56, %v2247_v60 }
0x1086   :  { %v1362_v4 = vsel %vm286_vm2, %v1348_v63, 0.0 }
0x1087   :  { %v1363_v34 = vadd.f32 %v1362_v4, %v1361_v2 }
0x1089   :  { %1452 = vst.msk [vmem:[#allocation7] sm:$0x3] %vm286_vm2, %v1363_v34  ;;  %1537 = vmatmul.mubr.msk.f32.vlgmr.msra.gmra.mxu1 %vm177_vm3, %v1363_v34 }
0x108a   :  { %1672 = shalt.err (!%p1669_p4)
}
0x108b   :  { %1474 = dma.vmem_to_hbm [thread:$0]  %s1472_s24, 32, %s2352_s9, [#allocation8]   ;;  %v1509_v11 = vld [vmem:[%s2350_s7] ss:$0 sm:$0xff]  ;;  %vm1453_vm14 = vcmask 25600  }
0x108c   :  { %s1710_s30 = smov [#allocation5]  }
0x108d   :  { %s1461_s10 = sshll.u32 %s1710_s30, 4  ;;  %s1462_s10 = int_to_ptr.vmem [resolvable:$true] %s1461_s10 }
0x108e   :  { %s1681_s11 = scalar_lea.vmem %s1462_s10, 32  ;;  %p1686_p6 = scmp.lt.s32.totalorder %s1462_s10, %s1462_s10 }
0x108f   :  { %p1682_p5 = scmp.ne.s32.totalorder %s1462_s10, %s1681_s11  ;;  %p1687_p7 = scmp.lt.s32.totalorder %s1681_s11, %s1681_s11 }
0x1091   :  { %p1688_p8 = por %p1687_p7, %p1686_p6 }
0x1093   :  { %p1689_p9 = pnand %p1688_p8, %p1682_p5 }
0x1149   :  { %v1448_v60 = vpop.f32.mrf.mxu1 }
0x114a   :  { %v1449_v8 = vadd.f32 %v1509_v11, %v1448_v60 }
0x114b   :  { %v1538_v16 = vpop.f32.mrf.mxu1 }
0x114c   :  { %1454 = vst.msk [vmem:[#allocation5] sm:$0x3] %vm1453_vm14, %v1449_v8 }
0x114d   :  { %1692 = shalt.err (!%p1689_p9)
}
0x114e   :  { %1464 = dma.vmem_to_hbm [thread:$0]  %s1462_s10, 32, %s2351_s8, [#allocation6]  }
0x114f   :  { %1701 = dma.done.wait [#allocation6], 32  }
0x1150   :  { %1702 = vsyncadd [#allocation6], 4294967264 }
0x1151   :  { %1703 = dma.done.wait [#allocation8], 32  }
0x1152   :  { %1704 = vsyncadd [#allocation8], 4294967264 }
0x1153   :  { %1481 = vsyncpa [#allocation6], 1 }
0x1154   :  { %1482 = vsyncpa [#allocation8], 1 }

</bundles_post_ra>
